<compile_context>
chip_gen: v5e
topology: v5e:2x2
jax: 0.10.0
libtpu: 0.0.40
codegen_flags: <defaults>
</compile_context>

<pallas_src>
import functools

import jax
import jax.numpy as jnp
from jax import lax
from jax.experimental import pallas as pl
from jax.experimental.pallas import tpu as pltpu


# Set to jnp.bfloat16 on v6e/v7x to feed the MXU at full rate (accumulation stays f32);
# default f32 keeps exact parity with the PyTorch (float32) module.
_MXU_DTYPE = jnp.float32
_ROW_TILE = 256          # row-tile size for token-parallel kernels
_LN_EPS = 1e-5


def _round_up(x, m):
    return (x + m - 1) // m * m


# ----------------------------------------------------------------------------
# Generic row-tiled pallas_call helper
#   row_arrays : (M, Ki) tensors tiled along rows (one tile per grid step)
#   full_arrays: 2-D tensors (weights / biases / LN params) passed whole each step
# ----------------------------------------------------------------------------

def _rowwise_pallas(kernel, row_arrays, full_arrays, out_cols, out_dtype):
    M = row_arrays[0].shape[0]
    tile = min(_ROW_TILE, _round_up(M, 8))
    Mp = _round_up(M, tile)
    if Mp != M:
        row_arrays = [jnp.pad(a, ((0, Mp - M), (0, 0))) for a in row_arrays]

    in_specs = []
    for a in row_arrays:
        in_specs.append(pl.BlockSpec((tile, a.shape[1]), lambda i: (i, 0)))
    for a in full_arrays:
        in_specs.append(pl.BlockSpec((a.shape[0], a.shape[1]), lambda i: (0, 0)))

    out = pl.pallas_call(
        kernel,
        out_shape=jax.ShapeDtypeStruct((Mp, out_cols), out_dtype),
        grid_spec=pltpu.PrefetchScalarGridSpec(
            num_scalar_prefetch=0,
            grid=(Mp // tile,),
            in_specs=in_specs,
            out_specs=pl.BlockSpec((tile, out_cols), lambda i: (i, 0)),
        ),
        compiler_params=pltpu.CompilerParams(dimension_semantics=("parallel",)),
    )(*row_arrays, *full_arrays)
    return out[:M]


# ----------------------------------------------------------------------------
# Kernels
# ----------------------------------------------------------------------------

def _linear_kernel(x_ref, w_ref, b_ref, o_ref):
    acc = jnp.dot(x_ref[...].astype(_MXU_DTYPE), w_ref[...].astype(_MXU_DTYPE),
                  preferred_element_type=jnp.float32)
    o_ref[...] = (acc + b_ref[...]).astype(o_ref.dtype)


def linear_pallas(x2d, w, b):
    """(M, K) @ (K, N) + b  with row tiling."""
    N = w.shape[1]
    return _rowwise_pallas(_linear_kernel, [x2d], [w, b.reshape(1, N)], N, x2d.dtype)


def _layernorm(x_f32, g_ref, b_ref, eps):
    mu = jnp.mean(x_f32, axis=-1, keepdims=True)
    var = jnp.mean((x_f32 - mu) ** 2, axis=-1, keepdims=True)
    y = (x_f32 - mu) * lax.rsqrt(var + eps)
    return y * g_ref[...] + b_ref[...]


def _proj_add_ln_kernel(a_ref, r_ref, w_ref, b_ref, g_ref, beta_ref, o_ref, *, eps):
    # LN( residual + attn @ Wo + bo )
    proj = jnp.dot(a_ref[...].astype(_MXU_DTYPE), w_ref[...].astype(_MXU_DTYPE),
                   preferred_element_type=jnp.float32) + b_ref[...]
    x = r_ref[...].astype(jnp.float32) + proj
    o_ref[...] = _layernorm(x, g_ref, beta_ref, eps).astype(o_ref.dtype)


def proj_add_ln_pallas(attn2d, resid2d, wo, bo, g, beta):
    D = wo.shape[1]
    kern = functools.partial(_proj_add_ln_kernel, eps=_LN_EPS)
    return _rowwise_pallas(kern, [attn2d, resid2d],
                           [wo, bo.reshape(1, D), g.reshape(1, D), beta.reshape(1, D)],
                           D, attn2d.dtype)


def _ffn_add_ln_kernel(x_ref, w1_ref, b1_ref, w2_ref, b2_ref, g_ref, beta_ref, o_ref, *, eps):
    # LN( x + W2 @ relu(W1 @ x + b1) + b2 )
    x = x_ref[...].astype(jnp.float32)
    h = jnp.dot(x.astype(_MXU_DTYPE), w1_ref[...].astype(_MXU_DTYPE),
                preferred_element_type=jnp.float32) + b1_ref[...]
    h = jnp.maximum(h, 0.0)
    f = jnp.dot(h.astype(_MXU_DTYPE), w2_ref[...].astype(_MXU_DTYPE),
                preferred_element_type=jnp.float32) + b2_ref[...]
    o_ref[...] = _layernorm(x + f, g_ref, beta_ref, eps).astype(o_ref.dtype)


def ffn_add_ln_pallas(x2d, w1, b1, w2, b2, g, beta):
    D, F = w1.shape
    kern = functools.partial(_ffn_add_ln_kernel, eps=_LN_EPS)
    return _rowwise_pallas(kern, [x2d],
                           [w1, b1.reshape(1, F), w2, b2.reshape(1, D),
                            g.reshape(1, D), beta.reshape(1, D)],
                           D, x2d.dtype)


def _ffn_add_ln_head_kernel(x_ref, w1_ref, b1_ref, w2_ref, b2_ref, g_ref, beta_ref,
                            wh_ref, bh_ref, o_ref, *, eps):
    # Last decoder layer: LN( x + FFN(x) ) followed by the Linear(d_model, 1) head,
    # done as a VPU multiply + lane reduce (avoids a lane-sparse N=1 MXU pass / extra HBM trip).
    x = x_ref[...].astype(jnp.float32)
    h = jnp.dot(x.astype(_MXU_DTYPE), w1_ref[...].astype(_MXU_DTYPE),
                preferred_element_type=jnp.float32) + b1_ref[...]
    h = jnp.maximum(h, 0.0)
    f = jnp.dot(h.astype(_MXU_DTYPE), w2_ref[...].astype(_MXU_DTYPE),
                preferred_element_type=jnp.float32) + b2_ref[...]
    y = _layernorm(x + f, g_ref, beta_ref, eps)
    out = jnp.sum(y * wh_ref[...], axis=-1, keepdims=True) + bh_ref[...]
    o_ref[...] = out.astype(o_ref.dtype)


def ffn_add_ln_head_pallas(x2d, w1, b1, w2, b2, g, beta, wh, bh):
    D, F = w1.shape
    kern = functools.partial(_ffn_add_ln_head_kernel, eps=_LN_EPS)
    return _rowwise_pallas(kern, [x2d],
                           [w1, b1.reshape(1, F), w2, b2.reshape(1, D),
                            g.reshape(1, D), beta.reshape(1, D),
                            wh.reshape(1, D), bh.reshape(1, 1)],
                           1, x2d.dtype)


def _embed_kernel(x_ref, w_ref, pe_ref, o_ref):
    # token/mark matmul with the sinusoidal positional embedding added in-kernel
    acc = jnp.dot(x_ref[...].astype(_MXU_DTYPE), w_ref[...].astype(_MXU_DTYPE),
                  preferred_element_type=jnp.float32)
    o_ref[...] = (acc + pe_ref[...]).astype(o_ref.dtype)


def embed_pallas(feats, w, pe):
    B, S, K = feats.shape
    D = w.shape[1]
    ts = min(512, _round_up(S, 8))
    Sp = _round_up(S, ts)
    if Sp != S:
        feats = jnp.pad(feats, ((0, 0), (0, Sp - S), (0, 0)))
        pe = jnp.pad(pe, ((0, Sp - S), (0, 0)))
    out = pl.pallas_call(
        _embed_kernel,
        out_shape=jax.ShapeDtypeStruct((B, Sp, D), feats.dtype),
        grid_spec=pltpu.PrefetchScalarGridSpec(
            num_scalar_prefetch=0,
            grid=(B, Sp // ts),
            in_specs=[pl.BlockSpec((None, ts, K), lambda b, s: (b, s, 0)),
                      pl.BlockSpec((K, D), lambda b, s: (0, 0)),
                      pl.BlockSpec((ts, D), lambda b, s: (s, 0))],
            out_specs=pl.BlockSpec((None, ts, D), lambda b, s: (b, s, 0)),
        ),
        compiler_params=pltpu.CompilerParams(
            dimension_semantics=("parallel", "parallel")),
    )(feats, w, pe)
    return out[:, :S]


def _flash_attn_kernel(q_ref, k_ref, v_ref, o_ref, m_sc, l_sc, acc_sc, *,
                       scale, causal, kv_len, block_k):
    kvi = pl.program_id(1)

    @pl.when(kvi == 0)
    def _():
        m_sc[...] = jnp.full_like(m_sc, -jnp.inf)
        l_sc[...] = jnp.zeros_like(l_sc)
        acc_sc[...] = jnp.zeros_like(acc_sc)

    q = q_ref[...].astype(jnp.float32)   # (Sq, hd)
    k = k_ref[...].astype(jnp.float32)   # (tk, hd)
    v = v_ref[...].astype(jnp.float32)   # (tk, hd)

    s = lax.dot_general(q, k, (((1,), (1,)), ((), ())),
                        preferred_element_type=jnp.float32) * scale   # (Sq, tk)
    Sq, tk = s.shape
    ki = kvi * block_k + lax.broadcasted_iota(jnp.int32, (Sq, tk), 1)
    mask = ki < kv_len
    if causal:
        qi = lax.broadcasted_iota(jnp.int32, (Sq, tk), 0)
        mask = mask & (ki <= qi)
    s = jnp.where(mask, s, -1e30)

    m_prev = m_sc[...]
    m_new = jnp.maximum(m_prev, jnp.max(s, axis=-1, keepdims=True))
    alpha = jnp.exp(m_prev - m_new)
    p = jnp.where(mask, jnp.exp(s - m_new), 0.0)
    l_sc[...] = alpha * l_sc[...] + jnp.sum(p, axis=-1, keepdims=True)
    acc_sc[...] = alpha * acc_sc[...] + lax.dot_general(
        p, v, (((1,), (0,)), ((), ())), preferred_element_type=jnp.float32)
    m_sc[...] = m_new

    @pl.when(kvi == pl.num_programs(1) - 1)
    def _():
        o_ref[...] = (acc_sc[...] *
                      pl.reciprocal(l_sc[...], approx=True)).astype(o_ref.dtype)


def attention_pallas(q, k, v, causal=False):
    """q: (BH, Sq, hd); k, v: (BH, Sk, hd). Flash-style online-softmax attention."""
    BH, Sq, hd = q.shape
    Sk = k.shape[1]
    tk = min(512, _round_up(Sk, 8))
    Sk_p = _round_up(Sk, tk)
    if Sk_p != Sk:
        pad = ((0, 0), (0, Sk_p - Sk), (0, 0))
        k = jnp.pad(k, pad)
        v = jnp.pad(v, pad)
    scale = 1.0 / float(hd) ** 0.5
    kern = functools.partial(_flash_attn_kernel, scale=scale, causal=causal,
                             kv_len=Sk, block_k=tk)
    return pl.pallas_call(
        kern,
        out_shape=jax.ShapeDtypeStruct((BH, Sq, hd), q.dtype),
        grid_spec=pltpu.PrefetchScalarGridSpec(
            num_scalar_prefetch=0,
            grid=(BH, Sk_p // tk),
            in_specs=[pl.BlockSpec((None, Sq, hd), lambda bh, kv: (bh, 0, 0)),
                      pl.BlockSpec((None, tk, hd), lambda bh, kv: (bh, kv, 0)),
                      pl.BlockSpec((None, tk, hd), lambda bh, kv: (bh, kv, 0))],
            out_specs=pl.BlockSpec((None, Sq, hd), lambda bh, kv: (bh, 0, 0)),
            scratch_shapes=[pltpu.VMEM((Sq, 1), jnp.float32),
                            pltpu.VMEM((Sq, 1), jnp.float32),
                            pltpu.VMEM((Sq, hd), jnp.float32)],
        ),
        compiler_params=pltpu.CompilerParams(
            dimension_semantics=("parallel", "arbitrary")),
    )(q, k, v)


# ----------------------------------------------------------------------------
# Model glue (plain JAX reshapes / parameter bookkeeping)
# ----------------------------------------------------------------------------

def _split_heads(t, B, S, nhead, hd):
    return jnp.transpose(t, (0, 2, 1, 3)).reshape(B * nhead, S, hd)


def mha_self_attend(x, p, nhead, causal=False):
    """Fused QKV projection + flash attention. Returns merged heads (B*S, D)
    BEFORE the output projection (which is fused into proj_add_ln)."""
    B, S, D = x.shape
    hd = D // nhead
    qkv = linear_pallas(x.reshape(B * S, D), p['w_qkv'], p['b_qkv'])
    qkv = qkv.reshape(B, S, 3, nhead, hd)
    q = _split_heads(qkv[:, :, 0], B, S, nhead, hd)
    k = _split_heads(qkv[:, :, 1], B, S, nhead, hd)
    v = _split_heads(qkv[:, :, 2], B, S, nhead, hd)
    o = attention_pallas(q, k, v, causal=causal)
    return o.reshape(B, nhead, S, hd).transpose(0, 2, 1, 3).reshape(B * S, D)


def mha_cross_attend(x_q, mem, p, nhead):
    B, Sq, D = x_q.shape
    Sk = mem.shape[1]
    hd = D // nhead
    q = linear_pallas(x_q.reshape(B * Sq, D), p['w_q'], p['b_q']).reshape(B, Sq, nhead, hd)
    kv = linear_pallas(mem.reshape(B * Sk, D), p['w_kv'], p['b_kv']).reshape(B, Sk, 2, nhead, hd)
    q = _split_heads(q, B, Sq, nhead, hd)
    k = _split_heads(kv[:, :, 0], B, Sk, nhead, hd)
    v = _split_heads(kv[:, :, 1], B, Sk, nhead, hd)
    o = attention_pallas(q, k, v, causal=False)
    return o.reshape(B, nhead, Sq, hd).transpose(0, 2, 1, 3).reshape(B * Sq, D)


def encoder_layer_fwd(x, p, nhead):
    # PyTorch TransformerEncoderLayer, norm_first=False (post-norm), activation=relu
    B, S, D = x.shape
    x2d = x.reshape(B * S, D)
    a = mha_self_attend(x, p['self_attn'], nhead)
    x2d = proj_add_ln_pallas(a, x2d, p['self_attn']['wo'], p['self_attn']['bo'],
                             p['ln1_g'], p['ln1_b'])
    x2d = ffn_add_ln_pallas(x2d, p['w1'], p['b1'], p['w2'], p['b2'],
                            p['ln2_g'], p['ln2_b'])
    return x2d.reshape(B, S, D)


def decoder_layer_fwd(x, mem, p, nhead, causal=False, head=None):
    B, S, D = x.shape
    x2d = x.reshape(B * S, D)
    a = mha_self_attend(x, p['self_attn'], nhead, causal=causal)
    x2d = proj_add_ln_pallas(a, x2d, p['self_attn']['wo'], p['self_attn']['bo'],
                             p['ln1_g'], p['ln1_b'])
    c = mha_cross_attend(x2d.reshape(B, S, D), mem, p['cross_attn'], nhead)
    x2d = proj_add_ln_pallas(c, x2d, p['cross_attn']['wo'], p['cross_attn']['bo'],
                             p['ln2_g'], p['ln2_b'])
    if head is None:
        x2d = ffn_add_ln_pallas(x2d, p['w1'], p['b1'], p['w2'], p['b2'],
                                p['ln3_g'], p['ln3_b'])
        return x2d.reshape(B, S, D)
    out = ffn_add_ln_head_pallas(x2d, p['w1'], p['b1'], p['w2'], p['b2'],
                                 p['ln3_g'], p['ln3_b'], head['w'], head['b'])
    return out.reshape(B, S, 1)


def sinusoidal_pe(S, D):
    pos = jnp.arange(S, dtype=jnp.float32)[:, None]
    i = jnp.arange(0, D, 2, dtype=jnp.float32)
    div = jnp.exp(-jnp.log(10000.0) * i / D)
    pe = jnp.zeros((S, D), jnp.float32)
    pe = pe.at[:, 0::2].set(jnp.sin(pos * div))
    pe = pe.at[:, 1::2].set(jnp.cos(pos * div))
    return pe


def data_embedding(x, x_mark, p):
    # TokenEmbedding: circular Conv1d(k=3, pad=1, no bias) expressed as one matmul on
    # [x shifted +1, x, x shifted -1] concatenated with the time marks; the sinusoidal PE is
    # added inside the same Pallas kernel.
    B, S, C = x.shape
    D = p['w_token'].shape[1]
    x_cat = jnp.concatenate([jnp.roll(x, 1, axis=1), x, jnp.roll(x, -1, axis=1)], axis=-1)
    feats = jnp.concatenate([x_cat, x_mark], axis=-1)           # (B, S, 3C + M)
    w = jnp.concatenate([p['w_token'], p['w_mark']], axis=0)    # (3C + M, D)
    pe = sinusoidal_pe(S, D).astype(x.dtype)
    return embed_pallas(feats, w, pe)  # dropout == identity (eval)


def transformer_forward(params, src_x, src_x_mark, tgt_x, tgt_x_mark, nhead,
                        tgt_mask_causal=False):
    src = data_embedding(src_x, src_x_mark, params['embed'])
    tgt = data_embedding(tgt_x, tgt_x_mark, params['embed'])
    mem = src
    for lp in params['enc_layers']:
        mem = encoder_layer_fwd(mem, lp, nhead)
    out = tgt
    n_dec = len(params['dec_layers'])
    if n_dec == 0:
        B, S, D = out.shape
        out2d = linear_pallas(out.reshape(B * S, D),
                              params['head']['w'].reshape(D, 1),
                              params['head']['b'].reshape(1))
        return out2d.reshape(B, S, 1)
    for i, lp in enumerate(params['dec_layers']):
        head = params['head'] if i == n_dec - 1 else None
        out = decoder_layer_fwd(out, mem, lp, nhead, causal=tgt_mask_causal, head=head)
    return out


# ----------------------------------------------------------------------------
# Deterministic parameter initialization (synthetic, no checkpoint)
# ----------------------------------------------------------------------------

def _init_self_attn(key, D, scale=0.02):
    k1, k2 = jax.random.split(key)
    f32 = jnp.float32
    return dict(
        w_qkv=scale * jax.random.normal(k1, (D, 3 * D), f32), b_qkv=jnp.zeros((3 * D,), f32),
        wo=scale * jax.random.normal(k2, (D, D), f32), bo=jnp.zeros((D,), f32),
    )


def _init_cross_attn(key, D, scale=0.02):
    k1, k2, k3 = jax.random.split(key, 3)
    f32 = jnp.float32
    return dict(
        w_q=scale * jax.random.normal(k1, (D, D), f32), b_q=jnp.zeros((D,), f32),
        w_kv=scale * jax.random.normal(k2, (D, 2 * D), f32), b_kv=jnp.zeros((2 * D,), f32),
        wo=scale * jax.random.normal(k3, (D, D), f32), bo=jnp.zeros((D,), f32),
    )


def _init_enc_layer(key, D, F, scale=0.02):
    ks = jax.random.split(key, 3)
    f32 = jnp.float32
    return dict(
        self_attn=_init_self_attn(ks[0], D, scale),
        ln1_g=jnp.ones((D,), f32), ln1_b=jnp.zeros((D,), f32),
        w1=scale * jax.random.normal(ks[1], (D, F), f32), b1=jnp.zeros((F,), f32),
        w2=scale * jax.random.normal(ks[2], (F, D), f32), b2=jnp.zeros((D,), f32),
        ln2_g=jnp.ones((D,), f32), ln2_b=jnp.zeros((D,), f32),
    )


def _init_dec_layer(key, D, F, scale=0.02):
    ks = jax.random.split(key, 4)
    f32 = jnp.float32
    return dict(
        self_attn=_init_self_attn(ks[0], D, scale),
        cross_attn=_init_cross_attn(ks[1], D, scale),
        ln1_g=jnp.ones((D,), f32), ln1_b=jnp.zeros((D,), f32),
        ln2_g=jnp.ones((D,), f32), ln2_b=jnp.zeros((D,), f32),
        w1=scale * jax.random.normal(ks[2], (D, F), f32), b1=jnp.zeros((F,), f32),
        w2=scale * jax.random.normal(ks[3], (F, D), f32), b2=jnp.zeros((D,), f32),
        ln3_g=jnp.ones((D,), f32), ln3_b=jnp.zeros((D,), f32),
    )


def init_params(key, input_dim, mark_dim, d_model, n_enc, n_dec, dim_ff, scale=0.02):
    f32 = jnp.float32
    keys = jax.random.split(key, 3 + n_enc + n_dec)
    embed = dict(
        w_token=scale * jax.random.normal(keys[0], (3 * input_dim, d_model), f32),
        w_mark=scale * jax.random.normal(keys[1], (mark_dim, d_model), f32),
    )
    enc_layers = [_init_enc_layer(keys[3 + i], d_model, dim_ff, scale) for i in range(n_enc)]
    dec_layers = [_init_dec_layer(keys[3 + n_enc + i], d_model, dim_ff, scale)
                  for i in range(n_dec)]
    head = dict(w=scale * jax.random.normal(keys[2], (1, d_model), f32),
                b=jnp.zeros((1, 1), f32))
    return dict(embed=embed, enc_layers=enc_layers, dec_layers=dec_layers, head=head)


# ----------------------------------------------------------------------------
# Demo
# ----------------------------------------------------------------------------

if __name__ == "__main__":
    # Small, forward-consistent shapes.
    B = 2
    S_src = 8
    S_tgt = 8
    input_dim = 4
    mark_dim = 4
    d_model = 32
    nhead = 4
    num_encoder_layers = 2
    num_decoder_layers = 2
    dim_feedforward = 64

    root = jax.random.PRNGKey(0)
    k_param, k_src, k_srcm, k_tgt, k_tgtm = jax.random.split(root, 5)

    params = init_params(k_param, input_dim, mark_dim, d_model,
                         num_encoder_layers, num_decoder_layers, dim_feedforward)

    src_x = jax.random.normal(k_src, (B, S_src, input_dim), jnp.float32)
    src_x_mark = jax.random.normal(k_srcm, (B, S_src, mark_dim), jnp.float32)
    tgt_x = jax.random.normal(k_tgt, (B, S_tgt, input_dim), jnp.float32)
    tgt_x_mark = jax.random.normal(k_tgtm, (B, S_tgt, mark_dim), jnp.float32)

    # tgt_mask / key padding masks default to None in the PyTorch forward -> unmasked here.
    fwd = jax.jit(functools.partial(transformer_forward, nhead=nhead,
                                    tgt_mask_causal=False))
    out = fwd(params, src_x, src_x_mark, tgt_x, tgt_x_mark)
    out = jax.block_until_ready(out)

    assert out.shape == (B, S_tgt, 1), out.shape
    assert bool(jnp.all(jnp.isfinite(out)))
    print("KERNEL_OK")
</pallas_src>

<mosaic_0001>
module attributes {stable_mosaic.version = 11 : i64} {
  func.func @_linear_kernel(%arg0: i32, %arg1: memref<16x32xf32, #tpu.memory_space<vmem>>, %arg2: memref<32x96xf32, #tpu.memory_space<vmem>>, %arg3: memref<1x96xf32, #tpu.memory_space<vmem>>, %arg4: memref<16x96xf32, #tpu.memory_space<vmem>>) attributes {dimension_semantics = [#tpu.dimension_semantics<parallel>], iteration_bounds = array<i64: 1>, scalar_prefetch = 0 : i64, scratch_operands = 0 : i64, tpu.core_type = #tpu.core_type<tc>, window_params = [{transform_indices = @transform_0, window_bounds = array<i64: 16, 32>}, {pipeline_mode = #tpu.pipeline_mode<synchronous>, transform_indices = @transform_1, window_bounds = array<i64: 32, 96>}, {pipeline_mode = #tpu.pipeline_mode<synchronous>, transform_indices = @transform_2, window_bounds = array<i64: 1, 96>}, {transform_indices = @transform_3, window_bounds = array<i64: 16, 96>}]} {
    %c0 = arith.constant 0 : index
    %c0_0 = arith.constant 0 : index
    %0 = vector.load %arg1[%c0, %c0_0] : memref<16x32xf32, #tpu.memory_space<vmem>>, vector<16x32xf32>
    %c0_1 = arith.constant 0 : index
    %c0_2 = arith.constant 0 : index
    %1 = vector.load %arg2[%c0_1, %c0_2] : memref<32x96xf32, #tpu.memory_space<vmem>>, vector<32x96xf32>
    %cst = arith.constant dense<0.000000e+00> : vector<16x96xf32>
    %2 = tpu.matmul %0, %1, %cst {dimension_numbers = #tpu.dot_dimension_numbers<[1], [0], [0], [1], [0, 0, 1, 1], [], []>} : vector<16x32xf32>, vector<32x96xf32>, vector<16x96xf32> -> vector<16x96xf32>
    %c0_3 = arith.constant 0 : index
    %c0_4 = arith.constant 0 : index
    %3 = vector.load %arg3[%c0_3, %c0_4] : memref<1x96xf32, #tpu.memory_space<vmem>>, vector<1x96xf32>
    %4 = vector.broadcast %3 : vector<1x96xf32> to vector<16x96xf32>
    %5 = arith.addf %2, %4 : vector<16x96xf32>
    %c0_5 = arith.constant 0 : index
    %c0_6 = arith.constant 0 : index
    %6 = vector.load %arg4[%c0_5, %c0_6] : memref<16x96xf32, #tpu.memory_space<vmem>>, vector<16x96xf32>
    tpu.vector_store %arg4[%c0_5, %c0_6], %5 {strides = array<i32>} : memref<16x96xf32, #tpu.memory_space<vmem>>, vector<16x96xf32>,
    return
  }
  func.func @transform_0(%arg0: i32) -> (i32, i32) {
    %c0_i32 = arith.constant 0 : i32
    %c0_i32_0 = arith.constant 0 : i32
    return %arg0, %c0_i32 : i32, i32
  }
  func.func @transform_1(%arg0: i32) -> (i32, i32) {
    %c0_i32 = arith.constant 0 : i32
    %c0_i32_0 = arith.constant 0 : i32
    %c0_i32_1 = arith.constant 0 : i32
    return %c0_i32, %c0_i32_0 : i32, i32
  }
  func.func @transform_2(%arg0: i32) -> (i32, i32) {
    %c0_i32 = arith.constant 0 : i32
    %c0_i32_0 = arith.constant 0 : i32
    %c0_i32_1 = arith.constant 0 : i32
    return %c0_i32, %c0_i32_0 : i32, i32
  }
  func.func @transform_3(%arg0: i32) -> (i32, i32) {
    %c0_i32 = arith.constant 0 : i32
    %c0_i32_0 = arith.constant 0 : i32
    return %arg0, %c0_i32 : i32, i32
  }
}

module attributes {stable_mosaic.version = 11 : i64} {
  func.func @_embed_kernel(%arg0: i32, %arg1: i32, %arg2: memref<1x8x16xf32, #tpu.memory_space<vmem>>, %arg3: memref<16x32xf32, #tpu.memory_space<vmem>>, %arg4: memref<8x32xf32, #tpu.memory_space<vmem>>, %arg5: memref<1x8x32xf32, #tpu.memory_space<vmem>>) attributes {dimension_semantics = [#tpu.dimension_semantics<parallel>, #tpu.dimension_semantics<parallel>], iteration_bounds = array<i64: 2, 1>, scalar_prefetch = 0 : i64, scratch_operands = 0 : i64, tpu.core_type = #tpu.core_type<tc>, window_params = [{transform_indices = @transform_0, window_bounds = array<i64: 1, 8, 16>}, {pipeline_mode = #tpu.pipeline_mode<synchronous>, transform_indices = @transform_1, window_bounds = array<i64: 16, 32>}, {transform_indices = @transform_2, window_bounds = array<i64: 8, 32>}, {transform_indices = @transform_3, window_bounds = array<i64: 1, 8, 32>}]} {
    %c0 = arith.constant 0 : index
    %c0_0 = arith.constant 0 : index
    %c0_1 = arith.constant 0 : index
    %0 = vector.load %arg2[%c0, %c0_0, %c0_1] : memref<1x8x16xf32, #tpu.memory_space<vmem>>, vector<1x8x16xf32>
    %1 = vector.shape_cast %0 : vector<1x8x16xf32> to vector<8x16xf32>
    %c0_2 = arith.constant 0 : index
    %c0_3 = arith.constant 0 : index
    %2 = vector.load %arg3[%c0_2, %c0_3] : memref<16x32xf32, #tpu.memory_space<vmem>>, vector<16x32xf32>
    %cst = arith.constant dense<0.000000e+00> : vector<8x32xf32>
    %3 = tpu.matmul %1, %2, %cst {dimension_numbers = #tpu.dot_dimension_numbers<[1], [0], [0], [1], [0, 0, 1, 1], [], []>} : vector<8x16xf32>, vector<16x32xf32>, vector<8x32xf32> -> vector<8x32xf32>
    %c0_4 = arith.constant 0 : index
    %c0_5 = arith.constant 0 : index
    %4 = vector.load %arg4[%c0_4, %c0_5] : memref<8x32xf32, #tpu.memory_space<vmem>>, vector<8x32xf32>
    %5 = arith.addf %3, %4 : vector<8x32xf32>
    %c0_6 = arith.constant 0 : index
    %c0_7 = arith.constant 0 : index
    %c0_8 = arith.constant 0 : index
    %6 = vector.load %arg5[%c0_6, %c0_7, %c0_8] : memref<1x8x32xf32, #tpu.memory_space<vmem>>, vector<1x8x32xf32>
    %7 = vector.shape_cast %6 : vector<1x8x32xf32> to vector<8x32xf32>
    %8 = vector.shape_cast %5 : vector<8x32xf32> to vector<1x8x32xf32>
    tpu.vector_store %arg5[%c0_6, %c0_7, %c0_8], %8 {strides = array<i32>} : memref<1x8x32xf32, #tpu.memory_space<vmem>>, vector<1x8x32xf32>,
    return
  }
  func.func @transform_0(%arg0: i32, %arg1: i32) -> (i32, i32, i32) {
    %c0_i32 = arith.constant 0 : i32
    %c0_i32_0 = arith.constant 0 : i32
    return %arg0, %arg1, %c0_i32 : i32, i32, i32
  }
  func.func @transform_1(%arg0: i32, %arg1: i32) -> (i32, i32) {
    %c0_i32 = arith.constant 0 : i32
    %c0_i32_0 = arith.constant 0 : i32
    %c0_i32_1 = arith.constant 0 : i32
    return %c0_i32, %c0_i32_0 : i32, i32
  }
  func.func @transform_2(%arg0: i32, %arg1: i32) -> (i32, i32) {
    %c0_i32 = arith.constant 0 : i32
    %c0_i32_0 = arith.constant 0 : i32
    return %arg1, %c0_i32 : i32, i32
  }
  func.func @transform_3(%arg0: i32, %arg1: i32) -> (i32, i32, i32) {
    %c0_i32 = arith.constant 0 : i32
    %c0_i32_0 = arith.constant 0 : i32
    return %arg0, %arg1, %c0_i32 : i32, i32, i32
  }
}

module attributes {stable_mosaic.version = 11 : i64} {
  func.func @_flash_attn_kernel(%arg0: i32, %arg1: i32, %arg2: memref<1x8x8xf32, #tpu.memory_space<vmem>>, %arg3: memref<1x8x8xf32, #tpu.memory_space<vmem>>, %arg4: memref<1x8x8xf32, #tpu.memory_space<vmem>>, %arg5: memref<1x8x8xf32, #tpu.memory_space<vmem>>, %arg6: memref<8x1xf32, #tpu.memory_space<vmem>>, %arg7: memref<8x1xf32, #tpu.memory_space<vmem>>, %arg8: memref<8x8xf32, #tpu.memory_space<vmem>>) attributes {dimension_semantics = [#tpu.dimension_semantics<parallel>, #tpu.dimension_semantics<arbitrary>], iteration_bounds = array<i64: 8, 1>, scalar_prefetch = 0 : i64, scratch_operands = 3 : i64, tpu.core_type = #tpu.core_type<tc>, window_params = [{transform_indices = @transform_0, window_bounds = array<i64: 1, 8, 8>}, {transform_indices = @transform_1, window_bounds = array<i64: 1, 8, 8>}, {transform_indices = @transform_2, window_bounds = array<i64: 1, 8, 8>}, {transform_indices = @transform_3, window_bounds = array<i64: 1, 8, 8>}]} {
    %c0_i32 = arith.constant 0 : i32
    %0 = arith.cmpi eq, %arg1, %c0_i32 : i32
    %1 = arith.extui %0 : i1 to i32
    %c0_i32_0 = arith.constant 0 : i32
    %2 = arith.cmpi ne, %1, %c0_i32_0 : i32
    scf.if %2 {
      %cst_30 = arith.constant 0xFF800000 : f32
      %47 = vector.broadcast %cst_30 : f32 to vector<8x1xf32>
      %c0_31 = arith.constant 0 : index
      %c0_32 = arith.constant 0 : index
      %48 = vector.load %arg6[%c0_31, %c0_32] : memref<8x1xf32, #tpu.memory_space<vmem>>, vector<8x1xf32>
      tpu.vector_store %arg6[%c0_31, %c0_32], %47 {strides = array<i32>} : memref<8x1xf32, #tpu.memory_space<vmem>>, vector<8x1xf32>,
      %cst_33 = arith.constant 0.000000e+00 : f32
      %49 = vector.broadcast %cst_33 : f32 to vector<8x1xf32>
      %c0_34 = arith.constant 0 : index
      %c0_35 = arith.constant 0 : index
      %50 = vector.load %arg7[%c0_34, %c0_35] : memref<8x1xf32, #tpu.memory_space<vmem>>, vector<8x1xf32>
      tpu.vector_store %arg7[%c0_34, %c0_35], %49 {strides = array<i32>} : memref<8x1xf32, #tpu.memory_space<vmem>>, vector<8x1xf32>,
      %cst_36 = arith.constant 0.000000e+00 : f32
      %51 = vector.broadcast %cst_36 : f32 to vector<8x8xf32>
      %c0_37 = arith.constant 0 : index
      %c0_38 = arith.constant 0 : index
      %52 = vector.load %arg8[%c0_37, %c0_38] : memref<8x8xf32, #tpu.memory_space<vmem>>, vector<8x8xf32>
      tpu.vector_store %arg8[%c0_37, %c0_38], %51 {strides = array<i32>} : memref<8x8xf32, #tpu.memory_space<vmem>>, vector<8x8xf32>,
    } else {
    }
    %c0 = arith.constant 0 : index
    %c0_1 = arith.constant 0 : index
    %c0_2 = arith.constant 0 : index
    %3 = vector.load %arg2[%c0, %c0_1, %c0_2] : memref<1x8x8xf32, #tpu.memory_space<vmem>>, vector<1x8x8xf32>
    %4 = vector.shape_cast %3 : vector<1x8x8xf32> to vector<8x8xf32>
    %c0_3 = arith.constant 0 : index
    %c0_4 = arith.constant 0 : index
    %c0_5 = arith.constant 0 : index
    %5 = vector.load %arg3[%c0_3, %c0_4, %c0_5] : memref<1x8x8xf32, #tpu.memory_space<vmem>>, vector<1x8x8xf32>
    %6 = vector.shape_cast %5 : vector<1x8x8xf32> to vector<8x8xf32>
    %c0_6 = arith.constant 0 : index
    %c0_7 = arith.constant 0 : index
    %c0_8 = arith.constant 0 : index
    %7 = vector.load %arg4[%c0_6, %c0_7, %c0_8] : memref<1x8x8xf32, #tpu.memory_space<vmem>>, vector<1x8x8xf32>
    %8 = vector.shape_cast %7 : vector<1x8x8xf32> to vector<8x8xf32>
    %cst = arith.constant dense<0.000000e+00> : vector<8x8xf32>
    %9 = tpu.matmul %4, %6, %cst {dimension_numbers = #tpu.dot_dimension_numbers<[1], [1], [0], [0], [0, 0, 1, 0], [], []>} : vector<8x8xf32>, vector<8x8xf32>, vector<8x8xf32> -> vector<8x8xf32>
    %cst_9 = arith.constant 0.353553385 : f32
    %10 = vector.broadcast %cst_9 : f32 to vector<8x8xf32>
    %11 = arith.mulf %9, %10 : vector<8x8xf32>
    %c8_i32 = arith.constant 8 : i32
    %12 = arith.muli %arg1, %c8_i32 : i32
    %13 = tpu.iota {dimensions = array<i32: 1>} : vector<8x8xi32>
    %14 = vector.broadcast %12 : i32 to vector<8x8xi32>
    %15 = arith.addi %14, %13 : vector<8x8xi32>
    %c8_i32_10 = arith.constant 8 : i32
    %16 = vector.broadcast %c8_i32_10 : i32 to vector<8x8xi32>
    %17 = arith.cmpi slt, %15, %16 : vector<8x8xi32>
    %cst_11 = arith.constant -1.000000e+30 : f32
    %18 = vector.broadcast %cst_11 : f32 to vector<8x8xf32>
    %19 = arith.select %17, %11, %18 : vector<8x8xi1>, vector<8x8xf32>
    %c0_12 = arith.constant 0 : index
    %c0_13 = arith.constant 0 : index
    %20 = vector.load %arg6[%c0_12, %c0_13] : memref<8x1xf32, #tpu.memory_space<vmem>>, vector<8x1xf32>
    %cst_14 = arith.constant dense<0xFF800000> : vector<8xf32>
    %21 = vector.multi_reduction <maximumf>, %19, %cst_14 [1] : vector<8x8xf32> to vector<8xf32>
    %22 = vector.shape_cast %21 : vector<8xf32> to vector<8x1xf32>
    %23 = arith.maximumf %20, %22 : vector<8x1xf32>
    %24 = arith.subf %20, %23 : vector<8x1xf32>
    %25 = math.exp %24 : vector<8x1xf32>
    %26 = vector.broadcast %23 : vector<8x1xf32> to vector<8x8xf32>
    %27 = arith.subf %19, %26 : vector<8x8xf32>
    %28 = math.exp %27 : vector<8x8xf32>
    %cst_15 = arith.constant 0.000000e+00 : f32
    %29 = vector.broadcast %cst_15 : f32 to vector<8x8xf32>
    %30 = arith.select %17, %28, %29 : vector<8x8xi1>, vector<8x8xf32>
    %c0_16 = arith.constant 0 : index
    %c0_17 = arith.constant 0 : index
    %31 = vector.load %arg7[%c0_16, %c0_17] : memref<8x1xf32, #tpu.memory_space<vmem>>, vector<8x1xf32>
    %32 = arith.mulf %25, %31 : vector<8x1xf32>
    %cst_18 = arith.constant dense<0.000000e+00> : vector<8xf32>
    %33 = vector.multi_reduction <add>, %30, %cst_18 [1] : vector<8x8xf32> to vector<8xf32>
    %34 = vector.shape_cast %33 : vector<8xf32> to vector<8x1xf32>
    %35 = arith.addf %32, %34 : vector<8x1xf32>
    %c0_19 = arith.constant 0 : index
    %c0_20 = arith.constant 0 : index
    %36 = vector.load %arg7[%c0_19, %c0_20] : memref<8x1xf32, #tpu.memory_space<vmem>>, vector<8x1xf32>
    tpu.vector_store %arg7[%c0_19, %c0_20], %35 {strides = array<i32>} : memref<8x1xf32, #tpu.memory_space<vmem>>, vector<8x1xf32>,
    %c0_21 = arith.constant 0 : index
    %c0_22 = arith.constant 0 : index
    %37 = vector.load %arg8[%c0_21, %c0_22] : memref<8x8xf32, #tpu.memory_space<vmem>>, vector<8x8xf32>
    %38 = vector.broadcast %25 : vector<8x1xf32> to vector<8x8xf32>
    %39 = arith.mulf %38, %37 : vector<8x8xf32>
    %cst_23 = arith.constant dense<0.000000e+00> : vector<8x8xf32>
    %40 = tpu.matmul %30, %8, %cst_23 {dimension_numbers = #tpu.dot_dimension_numbers<[1], [0], [0], [1], [0, 0, 1, 1], [], []>} : vector<8x8xf32>, vector<8x8xf32>, vector<8x8xf32> -> vector<8x8xf32>
    %41 = arith.addf %39, %40 : vector<8x8xf32>
    %c0_24 = arith.constant 0 : index
    %c0_25 = arith.constant 0 : index
    %42 = vector.load %arg8[%c0_24, %c0_25] : memref<8x8xf32, #tpu.memory_space<vmem>>, vector<8x8xf32>
    tpu.vector_store %arg8[%c0_24, %c0_25], %41 {strides = array<i32>} : memref<8x8xf32, #tpu.memory_space<vmem>>, vector<8x8xf32>,
    %c0_26 = arith.constant 0 : index
    %c0_27 = arith.constant 0 : index
    %43 = vector.load %arg6[%c0_26, %c0_27] : memref<8x1xf32, #tpu.memory_space<vmem>>, vector<8x1xf32>
    tpu.vector_store %arg6[%c0_26, %c0_27], %23 {strides = array<i32>} : memref<8x1xf32, #tpu.memory_space<vmem>>, vector<8x1xf32>,
    %c0_i32_28 = arith.constant 0 : i32
    %44 = arith.cmpi eq, %arg1, %c0_i32_28 : i32
    %45 = arith.extui %44 : i1 to i32
    %c0_i32_29 = arith.constant 0 : i32
    %46 = arith.cmpi ne, %45, %c0_i32_29 : i32
    scf.if %46 {
      %c0_30 = arith.constant 0 : index
      %c0_31 = arith.constant 0 : index
      %47 = vector.load %arg8[%c0_30, %c0_31] : memref<8x8xf32, #tpu.memory_space<vmem>>, vector<8x8xf32>
      %c0_32 = arith.constant 0 : index
      %c0_33 = arith.constant 0 : index
      %48 = vector.load %arg7[%c0_32, %c0_33] : memref<8x1xf32, #tpu.memory_space<vmem>>, vector<8x1xf32>
      %49 = tpu.reciprocal %48 {approx = true} : vector<8x1xf32> -> vector<8x1xf32>
      %50 = vector.broadcast %49 : vector<8x1xf32> to vector<8x8xf32>
      %51 = arith.mulf %47, %50 : vector<8x8xf32>
      %c0_34 = arith.constant 0 : index
      %c0_35 = arith.constant 0 : index
      %c0_36 = arith.constant 0 : index
      %52 = vector.load %arg5[%c0_34, %c0_35, %c0_36] : memref<1x8x8xf32, #tpu.memory_space<vmem>>, vector<1x8x8xf32>
      %53 = vector.shape_cast %52 : vector<1x8x8xf32> to vector<8x8xf32>
      %54 = vector.shape_cast %51 : vector<8x8xf32> to vector<1x8x8xf32>
      tpu.vector_store %arg5[%c0_34, %c0_35, %c0_36], %54 {strides = array<i32>} : memref<1x8x8xf32, #tpu.memory_space<vmem>>, vector<1x8x8xf32>,
    } else {
    }
    return
  }
  func.func @transform_0(%arg0: i32, %arg1: i32) -> (i32, i32, i32) {
    %c0_i32 = arith.constant 0 : i32
    %c0_i32_0 = arith.constant 0 : i32
    %c0_i32_1 = arith.constant 0 : i32
    return %arg0, %c0_i32, %c0_i32_0 : i32, i32, i32
  }
  func.func @transform_1(%arg0: i32, %arg1: i32) -> (i32, i32, i32) {
    %c0_i32 = arith.constant 0 : i32
    %c0_i32_0 = arith.constant 0 : i32
    return %arg0, %arg1, %c0_i32 : i32, i32, i32
  }
  func.func @transform_2(%arg0: i32, %arg1: i32) -> (i32, i32, i32) {
    %c0_i32 = arith.constant 0 : i32
    %c0_i32_0 = arith.constant 0 : i32
    return %arg0, %arg1, %c0_i32 : i32, i32, i32
  }
  func.func @transform_3(%arg0: i32, %arg1: i32) -> (i32, i32, i32) {
    %c0_i32 = arith.constant 0 : i32
    %c0_i32_0 = arith.constant 0 : i32
    %c0_i32_1 = arith.constant 0 : i32
    return %arg0, %c0_i32, %c0_i32_0 : i32, i32, i32
  }
}

module attributes {stable_mosaic.version = 11 : i64} {
  func.func @_proj_add_ln_kernel(%arg0: i32, %arg1: memref<16x32xf32, #tpu.memory_space<vmem>>, %arg2: memref<16x32xf32, #tpu.memory_space<vmem>>, %arg3: memref<32x32xf32, #tpu.memory_space<vmem>>, %arg4: memref<1x32xf32, #tpu.memory_space<vmem>>, %arg5: memref<1x32xf32, #tpu.memory_space<vmem>>, %arg6: memref<1x32xf32, #tpu.memory_space<vmem>>, %arg7: memref<16x32xf32, #tpu.memory_space<vmem>>) attributes {dimension_semantics = [#tpu.dimension_semantics<parallel>], iteration_bounds = array<i64: 1>, scalar_prefetch = 0 : i64, scratch_operands = 0 : i64, tpu.core_type = #tpu.core_type<tc>, window_params = [{transform_indices = @transform_0, window_bounds = array<i64: 16, 32>}, {transform_indices = @transform_1, window_bounds = array<i64: 16, 32>}, {pipeline_mode = #tpu.pipeline_mode<synchronous>, transform_indices = @transform_2, window_bounds = array<i64: 32, 32>}, {pipeline_mode = #tpu.pipeline_mode<synchronous>, transform_indices = @transform_3, window_bounds = array<i64: 1, 32>}, {pipeline_mode = #tpu.pipeline_mode<synchronous>, transform_indices = @transform_4, window_bounds = array<i64: 1, 32>}, {pipeline_mode = #tpu.pipeline_mode<synchronous>, transform_indices = @transform_5, window_bounds = array<i64: 1, 32>}, {transform_indices = @transform_6, window_bounds = array<i64: 16, 32>}]} {
    %c0 = arith.constant 0 : index
    %c0_0 = arith.constant 0 : index
    %0 = vector.load %arg1[%c0, %c0_0] : memref<16x32xf32, #tpu.memory_space<vmem>>, vector<16x32xf32>
    %c0_1 = arith.constant 0 : index
    %c0_2 = arith.constant 0 : index
    %1 = vector.load %arg3[%c0_1, %c0_2] : memref<32x32xf32, #tpu.memory_space<vmem>>, vector<32x32xf32>
    %cst = arith.constant dense<0.000000e+00> : vector<16x32xf32>
    %2 = tpu.matmul %0, %1, %cst {dimension_numbers = #tpu.dot_dimension_numbers<[1], [0], [0], [1], [0, 0, 1, 1], [], []>} : vector<16x32xf32>, vector<32x32xf32>, vector<16x32xf32> -> vector<16x32xf32>
    %c0_3 = arith.constant 0 : index
    %c0_4 = arith.constant 0 : index
    %3 = vector.load %arg4[%c0_3, %c0_4] : memref<1x32xf32, #tpu.memory_space<vmem>>, vector<1x32xf32>
    %4 = vector.broadcast %3 : vector<1x32xf32> to vector<16x32xf32>
    %5 = arith.addf %2, %4 : vector<16x32xf32>
    %c0_5 = arith.constant 0 : index
    %c0_6 = arith.constant 0 : index
    %6 = vector.load %arg2[%c0_5, %c0_6] : memref<16x32xf32, #tpu.memory_space<vmem>>, vector<16x32xf32>
    %7 = arith.addf %6, %5 : vector<16x32xf32>
    %cst_7 = arith.constant dense<0.000000e+00> : vector<16xf32>
    %8 = vector.multi_reduction <add>, %7, %cst_7 [1] : vector<16x32xf32> to vector<16xf32>
    %9 = vector.shape_cast %8 : vector<16xf32> to vector<16x1xf32>
    %cst_8 = arith.constant 3.200000e+01 : f32
    %10 = vector.broadcast %cst_8 : f32 to vector<16x1xf32>
    %11 = arith.divf %9, %10 : vector<16x1xf32>
    %12 = vector.broadcast %11 : vector<16x1xf32> to vector<16x32xf32>
    %13 = arith.subf %7, %12 : vector<16x32xf32>
    %14 = arith.mulf %13, %13 : vector<16x32xf32>
    %cst_9 = arith.constant dense<0.000000e+00> : vector<16xf32>
    %15 = vector.multi_reduction <add>, %14, %cst_9 [1] : vector<16x32xf32> to vector<16xf32>
    %16 = vector.shape_cast %15 : vector<16xf32> to vector<16x1xf32>
    %cst_10 = arith.constant 3.200000e+01 : f32
    %17 = vector.broadcast %cst_10 : f32 to vector<16x1xf32>
    %18 = arith.divf %16, %17 : vector<16x1xf32>
    %19 = vector.broadcast %11 : vector<16x1xf32> to vector<16x32xf32>
    %20 = arith.subf %7, %19 : vector<16x32xf32>
    %cst_11 = arith.constant 9.99999974E-6 : f32
    %21 = vector.broadcast %cst_11 : f32 to vector<16x1xf32>
    %22 = arith.addf %18, %21 : vector<16x1xf32>
    %23 = math.rsqrt %22 : vector<16x1xf32>
    %24 = vector.broadcast %23 : vector<16x1xf32> to vector<16x32xf32>
    %25 = arith.mulf %20, %24 : vector<16x32xf32>
    %c0_12 = arith.constant 0 : index
    %c0_13 = arith.constant 0 : index
    %26 = vector.load %arg5[%c0_12, %c0_13] : memref<1x32xf32, #tpu.memory_space<vmem>>, vector<1x32xf32>
    %27 = vector.broadcast %26 : vector<1x32xf32> to vector<16x32xf32>
    %28 = arith.mulf %25, %27 : vector<16x32xf32>
    %c0_14 = arith.constant 0 : index
    %c0_15 = arith.constant 0 : index
    %29 = vector.load %arg6[%c0_14, %c0_15] : memref<1x32xf32, #tpu.memory_space<vmem>>, vector<1x32xf32>
    %30 = vector.broadcast %29 : vector<1x32xf32> to vector<16x32xf32>
    %31 = arith.addf %28, %30 : vector<16x32xf32>
    %c0_16 = arith.constant 0 : index
    %c0_17 = arith.constant 0 : index
    %32 = vector.load %arg7[%c0_16, %c0_17] : memref<16x32xf32, #tpu.memory_space<vmem>>, vector<16x32xf32>
    tpu.vector_store %arg7[%c0_16, %c0_17], %31 {strides = array<i32>} : memref<16x32xf32, #tpu.memory_space<vmem>>, vector<16x32xf32>,
    return
  }
  func.func @transform_0(%arg0: i32) -> (i32, i32) {
    %c0_i32 = arith.constant 0 : i32
    %c0_i32_0 = arith.constant 0 : i32
    return %arg0, %c0_i32 : i32, i32
  }
  func.func @transform_1(%arg0: i32) -> (i32, i32) {
    %c0_i32 = arith.constant 0 : i32
    %c0_i32_0 = arith.constant 0 : i32
    return %arg0, %c0_i32 : i32, i32
  }
  func.func @transform_2(%arg0: i32) -> (i32, i32) {
    %c0_i32 = arith.constant 0 : i32
    %c0_i32_0 = arith.constant 0 : i32
    %c0_i32_1 = arith.constant 0 : i32
    return %c0_i32, %c0_i32_0 : i32, i32
  }
  func.func @transform_3(%arg0: i32) -> (i32, i32) {
    %c0_i32 = arith.constant 0 : i32
    %c0_i32_0 = arith.constant 0 : i32
    %c0_i32_1 = arith.constant 0 : i32
    return %c0_i32, %c0_i32_0 : i32, i32
  }
  func.func @transform_4(%arg0: i32) -> (i32, i32) {
    %c0_i32 = arith.constant 0 : i32
    %c0_i32_0 = arith.constant 0 : i32
    %c0_i32_1 = arith.constant 0 : i32
    return %c0_i32, %c0_i32_0 : i32, i32
  }
  func.func @transform_5(%arg0: i32) -> (i32, i32) {
    %c0_i32 = arith.constant 0 : i32
    %c0_i32_0 = arith.constant 0 : i32
    %c0_i32_1 = arith.constant 0 : i32
    return %c0_i32, %c0_i32_0 : i32, i32
  }
  func.func @transform_6(%arg0: i32) -> (i32, i32) {
    %c0_i32 = arith.constant 0 : i32
    %c0_i32_0 = arith.constant 0 : i32
    return %arg0, %c0_i32 : i32, i32
  }
}

module attributes {stable_mosaic.version = 11 : i64} {
  func.func @_linear_kernel(%arg0: i32, %arg1: memref<16x32xf32, #tpu.memory_space<vmem>>, %arg2: memref<32x32xf32, #tpu.memory_space<vmem>>, %arg3: memref<1x32xf32, #tpu.memory_space<vmem>>, %arg4: memref<16x32xf32, #tpu.memory_space<vmem>>) attributes {dimension_semantics = [#tpu.dimension_semantics<parallel>], iteration_bounds = array<i64: 1>, scalar_prefetch = 0 : i64, scratch_operands = 0 : i64, tpu.core_type = #tpu.core_type<tc>, window_params = [{transform_indices = @transform_0, window_bounds = array<i64: 16, 32>}, {pipeline_mode = #tpu.pipeline_mode<synchronous>, transform_indices = @transform_1, window_bounds = array<i64: 32, 32>}, {pipeline_mode = #tpu.pipeline_mode<synchronous>, transform_indices = @transform_2, window_bounds = array<i64: 1, 32>}, {transform_indices = @transform_3, window_bounds = array<i64: 16, 32>}]} {
    %c0 = arith.constant 0 : index
    %c0_0 = arith.constant 0 : index
    %0 = vector.load %arg1[%c0, %c0_0] : memref<16x32xf32, #tpu.memory_space<vmem>>, vector<16x32xf32>
    %c0_1 = arith.constant 0 : index
    %c0_2 = arith.constant 0 : index
    %1 = vector.load %arg2[%c0_1, %c0_2] : memref<32x32xf32, #tpu.memory_space<vmem>>, vector<32x32xf32>
    %cst = arith.constant dense<0.000000e+00> : vector<16x32xf32>
    %2 = tpu.matmul %0, %1, %cst {dimension_numbers = #tpu.dot_dimension_numbers<[1], [0], [0], [1], [0, 0, 1, 1], [], []>} : vector<16x32xf32>, vector<32x32xf32>, vector<16x32xf32> -> vector<16x32xf32>
    %c0_3 = arith.constant 0 : index
    %c0_4 = arith.constant 0 : index
    %3 = vector.load %arg3[%c0_3, %c0_4] : memref<1x32xf32, #tpu.memory_space<vmem>>, vector<1x32xf32>
    %4 = vector.broadcast %3 : vector<1x32xf32> to vector<16x32xf32>
    %5 = arith.addf %2, %4 : vector<16x32xf32>
    %c0_5 = arith.constant 0 : index
    %c0_6 = arith.constant 0 : index
    %6 = vector.load %arg4[%c0_5, %c0_6] : memref<16x32xf32, #tpu.memory_space<vmem>>, vector<16x32xf32>
    tpu.vector_store %arg4[%c0_5, %c0_6], %5 {strides = array<i32>} : memref<16x32xf32, #tpu.memory_space<vmem>>, vector<16x32xf32>,
    return
  }
  func.func @transform_0(%arg0: i32) -> (i32, i32) {
    %c0_i32 = arith.constant 0 : i32
    %c0_i32_0 = arith.constant 0 : i32
    return %arg0, %c0_i32 : i32, i32
  }
  func.func @transform_1(%arg0: i32) -> (i32, i32) {
    %c0_i32 = arith.constant 0 : i32
    %c0_i32_0 = arith.constant 0 : i32
    %c0_i32_1 = arith.constant 0 : i32
    return %c0_i32, %c0_i32_0 : i32, i32
  }
  func.func @transform_2(%arg0: i32) -> (i32, i32) {
    %c0_i32 = arith.constant 0 : i32
    %c0_i32_0 = arith.constant 0 : i32
    %c0_i32_1 = arith.constant 0 : i32
    return %c0_i32, %c0_i32_0 : i32, i32
  }
  func.func @transform_3(%arg0: i32) -> (i32, i32) {
    %c0_i32 = arith.constant 0 : i32
    %c0_i32_0 = arith.constant 0 : i32
    return %arg0, %c0_i32 : i32, i32
  }
}

module attributes {stable_mosaic.version = 11 : i64} {
  func.func @_ffn_add_ln_kernel(%arg0: i32, %arg1: memref<16x32xf32, #tpu.memory_space<vmem>>, %arg2: memref<32x64xf32, #tpu.memory_space<vmem>>, %arg3: memref<1x64xf32, #tpu.memory_space<vmem>>, %arg4: memref<64x32xf32, #tpu.memory_space<vmem>>, %arg5: memref<1x32xf32, #tpu.memory_space<vmem>>, %arg6: memref<1x32xf32, #tpu.memory_space<vmem>>, %arg7: memref<1x32xf32, #tpu.memory_space<vmem>>, %arg8: memref<16x32xf32, #tpu.memory_space<vmem>>) attributes {dimension_semantics = [#tpu.dimension_semantics<parallel>], iteration_bounds = array<i64: 1>, scalar_prefetch = 0 : i64, scratch_operands = 0 : i64, tpu.core_type = #tpu.core_type<tc>, window_params = [{transform_indices = @transform_0, window_bounds = array<i64: 16, 32>}, {pipeline_mode = #tpu.pipeline_mode<synchronous>, transform_indices = @transform_1, window_bounds = array<i64: 32, 64>}, {pipeline_mode = #tpu.pipeline_mode<synchronous>, transform_indices = @transform_2, window_bounds = array<i64: 1, 64>}, {pipeline_mode = #tpu.pipeline_mode<synchronous>, transform_indices = @transform_3, window_bounds = array<i64: 64, 32>}, {pipeline_mode = #tpu.pipeline_mode<synchronous>, transform_indices = @transform_4, window_bounds = array<i64: 1, 32>}, {pipeline_mode = #tpu.pipeline_mode<synchronous>, transform_indices = @transform_5, window_bounds = array<i64: 1, 32>}, {pipeline_mode = #tpu.pipeline_mode<synchronous>, transform_indices = @transform_6, window_bounds = array<i64: 1, 32>}, {transform_indices = @transform_7, window_bounds = array<i64: 16, 32>}]} {
    %c0 = arith.constant 0 : index
    %c0_0 = arith.constant 0 : index
    %0 = vector.load %arg1[%c0, %c0_0] : memref<16x32xf32, #tpu.memory_space<vmem>>, vector<16x32xf32>
    %c0_1 = arith.constant 0 : index
    %c0_2 = arith.constant 0 : index
    %1 = vector.load %arg2[%c0_1, %c0_2] : memref<32x64xf32, #tpu.memory_space<vmem>>, vector<32x64xf32>
    %cst = arith.constant dense<0.000000e+00> : vector<16x64xf32>
    %2 = tpu.matmul %0, %1, %cst {dimension_numbers = #tpu.dot_dimension_numbers<[1], [0], [0], [1], [0, 0, 1, 1], [], []>} : vector<16x32xf32>, vector<32x64xf32>, vector<16x64xf32> -> vector<16x64xf32>
    %c0_3 = arith.constant 0 : index
    %c0_4 = arith.constant 0 : index
    %3 = vector.load %arg3[%c0_3, %c0_4] : memref<1x64xf32, #tpu.memory_space<vmem>>, vector<1x64xf32>
    %4 = vector.broadcast %3 : vector<1x64xf32> to vector<16x64xf32>
    %5 = arith.addf %2, %4 : vector<16x64xf32>
    %cst_5 = arith.constant 0.000000e+00 : f32
    %6 = vector.broadcast %cst_5 : f32 to vector<16x64xf32>
    %7 = arith.maximumf %5, %6 : vector<16x64xf32>
    %c0_6 = arith.constant 0 : index
    %c0_7 = arith.constant 0 : index
    %8 = vector.load %arg4[%c0_6, %c0_7] : memref<64x32xf32, #tpu.memory_space<vmem>>, vector<64x32xf32>
    %cst_8 = arith.constant dense<0.000000e+00> : vector<16x32xf32>
    %9 = tpu.matmul %7, %8, %cst_8 {dimension_numbers = #tpu.dot_dimension_numbers<[1], [0], [0], [1], [0, 0, 1, 1], [], []>} : vector<16x64xf32>, vector<64x32xf32>, vector<16x32xf32> -> vector<16x32xf32>
    %c0_9 = arith.constant 0 : index
    %c0_10 = arith.constant 0 : index
    %10 = vector.load %arg5[%c0_9, %c0_10] : memref<1x32xf32, #tpu.memory_space<vmem>>, vector<1x32xf32>
    %11 = vector.broadcast %10 : vector<1x32xf32> to vector<16x32xf32>
    %12 = arith.addf %9, %11 : vector<16x32xf32>
    %13 = arith.addf %0, %12 : vector<16x32xf32>
    %cst_11 = arith.constant dense<0.000000e+00> : vector<16xf32>
    %14 = vector.multi_reduction <add>, %13, %cst_11 [1] : vector<16x32xf32> to vector<16xf32>
    %15 = vector.shape_cast %14 : vector<16xf32> to vector<16x1xf32>
    %cst_12 = arith.constant 3.200000e+01 : f32
    %16 = vector.broadcast %cst_12 : f32 to vector<16x1xf32>
    %17 = arith.divf %15, %16 : vector<16x1xf32>
    %18 = vector.broadcast %17 : vector<16x1xf32> to vector<16x32xf32>
    %19 = arith.subf %13, %18 : vector<16x32xf32>
    %20 = arith.mulf %19, %19 : vector<16x32xf32>
    %cst_13 = arith.constant dense<0.000000e+00> : vector<16xf32>
    %21 = vector.multi_reduction <add>, %20, %cst_13 [1] : vector<16x32xf32> to vector<16xf32>
    %22 = vector.shape_cast %21 : vector<16xf32> to vector<16x1xf32>
    %cst_14 = arith.constant 3.200000e+01 : f32
    %23 = vector.broadcast %cst_14 : f32 to vector<16x1xf32>
    %24 = arith.divf %22, %23 : vector<16x1xf32>
    %25 = vector.broadcast %17 : vector<16x1xf32> to vector<16x32xf32>
    %26 = arith.subf %13, %25 : vector<16x32xf32>
    %cst_15 = arith.constant 9.99999974E-6 : f32
    %27 = vector.broadcast %cst_15 : f32 to vector<16x1xf32>
    %28 = arith.addf %24, %27 : vector<16x1xf32>
    %29 = math.rsqrt %28 : vector<16x1xf32>
    %30 = vector.broadcast %29 : vector<16x1xf32> to vector<16x32xf32>
    %31 = arith.mulf %26, %30 : vector<16x32xf32>
    %c0_16 = arith.constant 0 : index
    %c0_17 = arith.constant 0 : index
    %32 = vector.load %arg6[%c0_16, %c0_17] : memref<1x32xf32, #tpu.memory_space<vmem>>, vector<1x32xf32>
    %33 = vector.broadcast %32 : vector<1x32xf32> to vector<16x32xf32>
    %34 = arith.mulf %31, %33 : vector<16x32xf32>
    %c0_18 = arith.constant 0 : index
    %c0_19 = arith.constant 0 : index
    %35 = vector.load %arg7[%c0_18, %c0_19] : memref<1x32xf32, #tpu.memory_space<vmem>>, vector<1x32xf32>
    %36 = vector.broadcast %35 : vector<1x32xf32> to vector<16x32xf32>
    %37 = arith.addf %34, %36 : vector<16x32xf32>
    %c0_20 = arith.constant 0 : index
    %c0_21 = arith.constant 0 : index
    %38 = vector.load %arg8[%c0_20, %c0_21] : memref<16x32xf32, #tpu.memory_space<vmem>>, vector<16x32xf32>
    tpu.vector_store %arg8[%c0_20, %c0_21], %37 {strides = array<i32>} : memref<16x32xf32, #tpu.memory_space<vmem>>, vector<16x32xf32>,
    return
  }
  func.func @transform_0(%arg0: i32) -> (i32, i32) {
    %c0_i32 = arith.constant 0 : i32
    %c0_i32_0 = arith.constant 0 : i32
    return %arg0, %c0_i32 : i32, i32
  }
  func.func @transform_1(%arg0: i32) -> (i32, i32) {
    %c0_i32 = arith.constant 0 : i32
    %c0_i32_0 = arith.constant 0 : i32
    %c0_i32_1 = arith.constant 0 : i32
    return %c0_i32, %c0_i32_0 : i32, i32
  }
  func.func @transform_2(%arg0: i32) -> (i32, i32) {
    %c0_i32 = arith.constant 0 : i32
    %c0_i32_0 = arith.constant 0 : i32
    %c0_i32_1 = arith.constant 0 : i32
    return %c0_i32, %c0_i32_0 : i32, i32
  }
  func.func @transform_3(%arg0: i32) -> (i32, i32) {
    %c0_i32 = arith.constant 0 : i32
    %c0_i32_0 = arith.constant 0 : i32
    %c0_i32_1 = arith.constant 0 : i32
    return %c0_i32, %c0_i32_0 : i32, i32
  }
  func.func @transform_4(%arg0: i32) -> (i32, i32) {
    %c0_i32 = arith.constant 0 : i32
    %c0_i32_0 = arith.constant 0 : i32
    %c0_i32_1 = arith.constant 0 : i32
    return %c0_i32, %c0_i32_0 : i32, i32
  }
  func.func @transform_5(%arg0: i32) -> (i32, i32) {
    %c0_i32 = arith.constant 0 : i32
    %c0_i32_0 = arith.constant 0 : i32
    %c0_i32_1 = arith.constant 0 : i32
    return %c0_i32, %c0_i32_0 : i32, i32
  }
  func.func @transform_6(%arg0: i32) -> (i32, i32) {
    %c0_i32 = arith.constant 0 : i32
    %c0_i32_0 = arith.constant 0 : i32
    %c0_i32_1 = arith.constant 0 : i32
    return %c0_i32, %c0_i32_0 : i32, i32
  }
  func.func @transform_7(%arg0: i32) -> (i32, i32) {
    %c0_i32 = arith.constant 0 : i32
    %c0_i32_0 = arith.constant 0 : i32
    return %arg0, %c0_i32 : i32, i32
  }
}

module attributes {stable_mosaic.version = 11 : i64} {
  func.func @_linear_kernel(%arg0: i32, %arg1: memref<16x32xf32, #tpu.memory_space<vmem>>, %arg2: memref<32x64xf32, #tpu.memory_space<vmem>>, %arg3: memref<1x64xf32, #tpu.memory_space<vmem>>, %arg4: memref<16x64xf32, #tpu.memory_space<vmem>>) attributes {dimension_semantics = [#tpu.dimension_semantics<parallel>], iteration_bounds = array<i64: 1>, scalar_prefetch = 0 : i64, scratch_operands = 0 : i64, tpu.core_type = #tpu.core_type<tc>, window_params = [{transform_indices = @transform_0, window_bounds = array<i64: 16, 32>}, {pipeline_mode = #tpu.pipeline_mode<synchronous>, transform_indices = @transform_1, window_bounds = array<i64: 32, 64>}, {pipeline_mode = #tpu.pipeline_mode<synchronous>, transform_indices = @transform_2, window_bounds = array<i64: 1, 64>}, {transform_indices = @transform_3, window_bounds = array<i64: 16, 64>}]} {
    %c0 = arith.constant 0 : index
    %c0_0 = arith.constant 0 : index
    %0 = vector.load %arg1[%c0, %c0_0] : memref<16x32xf32, #tpu.memory_space<vmem>>, vector<16x32xf32>
    %c0_1 = arith.constant 0 : index
    %c0_2 = arith.constant 0 : index
    %1 = vector.load %arg2[%c0_1, %c0_2] : memref<32x64xf32, #tpu.memory_space<vmem>>, vector<32x64xf32>
    %cst = arith.constant dense<0.000000e+00> : vector<16x64xf32>
    %2 = tpu.matmul %0, %1, %cst {dimension_numbers = #tpu.dot_dimension_numbers<[1], [0], [0], [1], [0, 0, 1, 1], [], []>} : vector<16x32xf32>, vector<32x64xf32>, vector<16x64xf32> -> vector<16x64xf32>
    %c0_3 = arith.constant 0 : index
    %c0_4 = arith.constant 0 : index
    %3 = vector.load %arg3[%c0_3, %c0_4] : memref<1x64xf32, #tpu.memory_space<vmem>>, vector<1x64xf32>
    %4 = vector.broadcast %3 : vector<1x64xf32> to vector<16x64xf32>
    %5 = arith.addf %2, %4 : vector<16x64xf32>
    %c0_5 = arith.constant 0 : index
    %c0_6 = arith.constant 0 : index
    %6 = vector.load %arg4[%c0_5, %c0_6] : memref<16x64xf32, #tpu.memory_space<vmem>>, vector<16x64xf32>
    tpu.vector_store %arg4[%c0_5, %c0_6], %5 {strides = array<i32>} : memref<16x64xf32, #tpu.memory_space<vmem>>, vector<16x64xf32>,
    return
  }
  func.func @transform_0(%arg0: i32) -> (i32, i32) {
    %c0_i32 = arith.constant 0 : i32
    %c0_i32_0 = arith.constant 0 : i32
    return %arg0, %c0_i32 : i32, i32
  }
  func.func @transform_1(%arg0: i32) -> (i32, i32) {
    %c0_i32 = arith.constant 0 : i32
    %c0_i32_0 = arith.constant 0 : i32
    %c0_i32_1 = arith.constant 0 : i32
    return %c0_i32, %c0_i32_0 : i32, i32
  }
  func.func @transform_2(%arg0: i32) -> (i32, i32) {
    %c0_i32 = arith.constant 0 : i32
    %c0_i32_0 = arith.constant 0 : i32
    %c0_i32_1 = arith.constant 0 : i32
    return %c0_i32, %c0_i32_0 : i32, i32
  }
  func.func @transform_3(%arg0: i32) -> (i32, i32) {
    %c0_i32 = arith.constant 0 : i32
    %c0_i32_0 = arith.constant 0 : i32
    return %arg0, %c0_i32 : i32, i32
  }
}

module attributes {stable_mosaic.version = 11 : i64} {
  func.func @_ffn_add_ln_head_kernel(%arg0: i32, %arg1: memref<16x32xf32, #tpu.memory_space<vmem>>, %arg2: memref<32x64xf32, #tpu.memory_space<vmem>>, %arg3: memref<1x64xf32, #tpu.memory_space<vmem>>, %arg4: memref<64x32xf32, #tpu.memory_space<vmem>>, %arg5: memref<1x32xf32, #tpu.memory_space<vmem>>, %arg6: memref<1x32xf32, #tpu.memory_space<vmem>>, %arg7: memref<1x32xf32, #tpu.memory_space<vmem>>, %arg8: memref<1x32xf32, #tpu.memory_space<vmem>>, %arg9: memref<1x1xf32, #tpu.memory_space<vmem>>, %arg10: memref<16x1xf32, #tpu.memory_space<vmem>>) attributes {dimension_semantics = [#tpu.dimension_semantics<parallel>], iteration_bounds = array<i64: 1>, scalar_prefetch = 0 : i64, scratch_operands = 0 : i64, tpu.core_type = #tpu.core_type<tc>, window_params = [{transform_indices = @transform_0, window_bounds = array<i64: 16, 32>}, {pipeline_mode = #tpu.pipeline_mode<synchronous>, transform_indices = @transform_1, window_bounds = array<i64: 32, 64>}, {pipeline_mode = #tpu.pipeline_mode<synchronous>, transform_indices = @transform_2, window_bounds = array<i64: 1, 64>}, {pipeline_mode = #tpu.pipeline_mode<synchronous>, transform_indices = @transform_3, window_bounds = array<i64: 64, 32>}, {pipeline_mode = #tpu.pipeline_mode<synchronous>, transform_indices = @transform_4, window_bounds = array<i64: 1, 32>}, {pipeline_mode = #tpu.pipeline_mode<synchronous>, transform_indices = @transform_5, window_bounds = array<i64: 1, 32>}, {pipeline_mode = #tpu.pipeline_mode<synchronous>, transform_indices = @transform_6, window_bounds = array<i64: 1, 32>}, {pipeline_mode = #tpu.pipeline_mode<synchronous>, transform_indices = @transform_7, window_bounds = array<i64: 1, 32>}, {pipeline_mode = #tpu.pipeline_mode<synchronous>, transform_indices = @transform_8, window_bounds = array<i64: 1, 1>}, {transform_indices = @transform_9, window_bounds = array<i64: 16, 1>}]} {
    %c0 = arith.constant 0 : index
    %c0_0 = arith.constant 0 : index
    %0 = vector.load %arg1[%c0, %c0_0] : memref<16x32xf32, #tpu.memory_space<vmem>>, vector<16x32xf32>
    %c0_1 = arith.constant 0 : index
    %c0_2 = arith.constant 0 : index
    %1 = vector.load %arg2[%c0_1, %c0_2] : memref<32x64xf32, #tpu.memory_space<vmem>>, vector<32x64xf32>
    %cst = arith.constant dense<0.000000e+00> : vector<16x64xf32>
    %2 = tpu.matmul %0, %1, %cst {dimension_numbers = #tpu.dot_dimension_numbers<[1], [0], [0], [1], [0, 0, 1, 1], [], []>} : vector<16x32xf32>, vector<32x64xf32>, vector<16x64xf32> -> vector<16x64xf32>
    %c0_3 = arith.constant 0 : index
    %c0_4 = arith.constant 0 : index
    %3 = vector.load %arg3[%c0_3, %c0_4] : memref<1x64xf32, #tpu.memory_space<vmem>>, vector<1x64xf32>
    %4 = vector.broadcast %3 : vector<1x64xf32> to vector<16x64xf32>
    %5 = arith.addf %2, %4 : vector<16x64xf32>
    %cst_5 = arith.constant 0.000000e+00 : f32
    %6 = vector.broadcast %cst_5 : f32 to vector<16x64xf32>
    %7 = arith.maximumf %5, %6 : vector<16x64xf32>
    %c0_6 = arith.constant 0 : index
    %c0_7 = arith.constant 0 : index
    %8 = vector.load %arg4[%c0_6, %c0_7] : memref<64x32xf32, #tpu.memory_space<vmem>>, vector<64x32xf32>
    %cst_8 = arith.constant dense<0.000000e+00> : vector<16x32xf32>
    %9 = tpu.matmul %7, %8, %cst_8 {dimension_numbers = #tpu.dot_dimension_numbers<[1], [0], [0], [1], [0, 0, 1, 1], [], []>} : vector<16x64xf32>, vector<64x32xf32>, vector<16x32xf32> -> vector<16x32xf32>
    %c0_9 = arith.constant 0 : index
    %c0_10 = arith.constant 0 : index
    %10 = vector.load %arg5[%c0_9, %c0_10] : memref<1x32xf32, #tpu.memory_space<vmem>>, vector<1x32xf32>
    %11 = vector.broadcast %10 : vector<1x32xf32> to vector<16x32xf32>
    %12 = arith.addf %9, %11 : vector<16x32xf32>
    %13 = arith.addf %0, %12 : vector<16x32xf32>
    %cst_11 = arith.constant dense<0.000000e+00> : vector<16xf32>
    %14 = vector.multi_reduction <add>, %13, %cst_11 [1] : vector<16x32xf32> to vector<16xf32>
    %15 = vector.shape_cast %14 : vector<16xf32> to vector<16x1xf32>
    %cst_12 = arith.constant 3.200000e+01 : f32
    %16 = vector.broadcast %cst_12 : f32 to vector<16x1xf32>
    %17 = arith.divf %15, %16 : vector<16x1xf32>
    %18 = vector.broadcast %17 : vector<16x1xf32> to vector<16x32xf32>
    %19 = arith.subf %13, %18 : vector<16x32xf32>
    %20 = arith.mulf %19, %19 : vector<16x32xf32>
    %cst_13 = arith.constant dense<0.000000e+00> : vector<16xf32>
    %21 = vector.multi_reduction <add>, %20, %cst_13 [1] : vector<16x32xf32> to vector<16xf32>
    %22 = vector.shape_cast %21 : vector<16xf32> to vector<16x1xf32>
    %cst_14 = arith.constant 3.200000e+01 : f32
    %23 = vector.broadcast %cst_14 : f32 to vector<16x1xf32>
    %24 = arith.divf %22, %23 : vector<16x1xf32>
    %25 = vector.broadcast %17 : vector<16x1xf32> to vector<16x32xf32>
    %26 = arith.subf %13, %25 : vector<16x32xf32>
    %cst_15 = arith.constant 9.99999974E-6 : f32
    %27 = vector.broadcast %cst_15 : f32 to vector<16x1xf32>
    %28 = arith.addf %24, %27 : vector<16x1xf32>
    %29 = math.rsqrt %28 : vector<16x1xf32>
    %30 = vector.broadcast %29 : vector<16x1xf32> to vector<16x32xf32>
    %31 = arith.mulf %26, %30 : vector<16x32xf32>
    %c0_16 = arith.constant 0 : index
    %c0_17 = arith.constant 0 : index
    %32 = vector.load %arg6[%c0_16, %c0_17] : memref<1x32xf32, #tpu.memory_space<vmem>>, vector<1x32xf32>
    %33 = vector.broadcast %32 : vector<1x32xf32> to vector<16x32xf32>
    %34 = arith.mulf %31, %33 : vector<16x32xf32>
    %c0_18 = arith.constant 0 : index
    %c0_19 = arith.constant 0 : index
    %35 = vector.load %arg7[%c0_18, %c0_19] : memref<1x32xf32, #tpu.memory_space<vmem>>, vector<1x32xf32>
    %36 = vector.broadcast %35 : vector<1x32xf32> to vector<16x32xf32>
    %37 = arith.addf %34, %36 : vector<16x32xf32>
    %c0_20 = arith.constant 0 : index
    %c0_21 = arith.constant 0 : index
    %38 = vector.load %arg8[%c0_20, %c0_21] : memref<1x32xf32, #tpu.memory_space<vmem>>, vector<1x32xf32>
    %39 = vector.broadcast %38 : vector<1x32xf32> to vector<16x32xf32>
    %40 = arith.mulf %37, %39 : vector<16x32xf32>
    %cst_22 = arith.constant dense<0.000000e+00> : vector<16xf32>
    %41 = vector.multi_reduction <add>, %40, %cst_22 [1] : vector<16x32xf32> to vector<16xf32>
    %42 = vector.shape_cast %41 : vector<16xf32> to vector<16x1xf32>
    %c0_23 = arith.constant 0 : index
    %c0_24 = arith.constant 0 : index
    %43 = vector.load %arg9[%c0_23, %c0_24] : memref<1x1xf32, #tpu.memory_space<vmem>>, vector<1x1xf32>
    %44 = vector.broadcast %43 : vector<1x1xf32> to vector<16x1xf32>
    %45 = arith.addf %42, %44 : vector<16x1xf32>
    %c0_25 = arith.constant 0 : index
    %c0_26 = arith.constant 0 : index
    %46 = vector.load %arg10[%c0_25, %c0_26] : memref<16x1xf32, #tpu.memory_space<vmem>>, vector<16x1xf32>
    tpu.vector_store %arg10[%c0_25, %c0_26], %45 {strides = array<i32>} : memref<16x1xf32, #tpu.memory_space<vmem>>, vector<16x1xf32>,
    return
  }
  func.func @transform_0(%arg0: i32) -> (i32, i32) {
    %c0_i32 = arith.constant 0 : i32
    %c0_i32_0 = arith.constant 0 : i32
    return %arg0, %c0_i32 : i32, i32
  }
  func.func @transform_1(%arg0: i32) -> (i32, i32) {
    %c0_i32 = arith.constant 0 : i32
    %c0_i32_0 = arith.constant 0 : i32
    %c0_i32_1 = arith.constant 0 : i32
    return %c0_i32, %c0_i32_0 : i32, i32
  }
  func.func @transform_2(%arg0: i32) -> (i32, i32) {
    %c0_i32 = arith.constant 0 : i32
    %c0_i32_0 = arith.constant 0 : i32
    %c0_i32_1 = arith.constant 0 : i32
    return %c0_i32, %c0_i32_0 : i32, i32
  }
  func.func @transform_3(%arg0: i32) -> (i32, i32) {
    %c0_i32 = arith.constant 0 : i32
    %c0_i32_0 = arith.constant 0 : i32
    %c0_i32_1 = arith.constant 0 : i32
    return %c0_i32, %c0_i32_0 : i32, i32
  }
  func.func @transform_4(%arg0: i32) -> (i32, i32) {
    %c0_i32 = arith.constant 0 : i32
    %c0_i32_0 = arith.constant 0 : i32
    %c0_i32_1 = arith.constant 0 : i32
    return %c0_i32, %c0_i32_0 : i32, i32
  }
  func.func @transform_5(%arg0: i32) -> (i32, i32) {
    %c0_i32 = arith.constant 0 : i32
    %c0_i32_0 = arith.constant 0 : i32
    %c0_i32_1 = arith.constant 0 : i32
    return %c0_i32, %c0_i32_0 : i32, i32
  }
  func.func @transform_6(%arg0: i32) -> (i32, i32) {
    %c0_i32 = arith.constant 0 : i32
    %c0_i32_0 = arith.constant 0 : i32
    %c0_i32_1 = arith.constant 0 : i32
    return %c0_i32, %c0_i32_0 : i32, i32
  }
  func.func @transform_7(%arg0: i32) -> (i32, i32) {
    %c0_i32 = arith.constant 0 : i32
    %c0_i32_0 = arith.constant 0 : i32
    %c0_i32_1 = arith.constant 0 : i32
    return %c0_i32, %c0_i32_0 : i32, i32
  }
  func.func @transform_8(%arg0: i32) -> (i32, i32) {
    %c0_i32 = arith.constant 0 : i32
    %c0_i32_0 = arith.constant 0 : i32
    %c0_i32_1 = arith.constant 0 : i32
    return %c0_i32, %c0_i32_0 : i32, i32
  }
  func.func @transform_9(%arg0: i32) -> (i32, i32) {
    %c0_i32 = arith.constant 0 : i32
    %c0_i32_0 = arith.constant 0 : i32
    return %arg0, %c0_i32 : i32, i32
  }
}

</mosaic_0001>

<bundles_post_ra>
// kernel: transformer_forward.27
= control target key start
LH: loop header
LB: loop body
LE: loop exit
PB: predicated region body
PF: predicated region fallthrough
CT: control target
= control target key end

     0   :  { %s413_s12 = smov 0   ;;  %s415_s13 = smov 0   ;;  %s448_s0 = inlined_call_operand.vmem [shape: f32[2,8,16], index: 0, kind: input, shape index: {}]   ;;  %s449_s1 = inlined_call_operand.vmem [shape: f32[16,32], index: 1, kind: input, shape index: {}]   ;;  %s450_s2 = inlined_call_operand.vmem [shape: f32[8,32], index: 2, kind: input, shape index: {}]   ;;  %s451_s3 = inlined_call_operand.vmem [shape: f32[2,8,32], index: 3, kind: output, shape index: {}]  }
   0x1   :  { %s417_s14 = smov 0  }
   0x2 LB: > { %s25_s15 = sadd.s32 1, %s387_s13  ;;  %p339_p0 = scmp.ge.s32.totalorder %s391_s14, 1  ;;  %s391_s14 = sphi %s417_s14, %s13_s14   ;;  %s387_s13 = sphi %s415_s13, %s453_s13   ;;  %s383_s12 = sphi %s413_s12, %s452_s12  }
   0x3   : > { %p27_p1 = scmp.ge.s32.totalorder %s25_s15, 2  ;;  %p164_p2 = scmp.lt.s32.totalorder %s391_s14, 3 }
   0x5   : > { %s455_s15 = smov (%p27_p1, %s25_s15), 0  ;;  %p165_p3 = pnand %p339_p0, %p164_p2 }
   0x6   : > { %p196_p4 = scmp.lt.s32.totalorder (!%p165_p3), %s383_s12, 1 }
   0x7   : > { %168 = sbr.rel (%p165_p3) target bundleno = 145 (0x91), region = 32 }
   0xc   : > { %v216_v0 = vld [vmem:[%s449_s1 + $0x8] sm:$0xff]  ;;  %v215_v1 = vld [vmem:[%s449_s1] sm:$0xff]  ;;  %s457_s12 = smov (!%p196_p4, %s383_s12), 1  ;;  %vm218_vm0 = vcmask 130048   ;;  %vm242_vm1 = vcmask 261120  }
   0xd   : > { %236 = vmatpush.msra.mxu0 %v216_v0  ;;  %s340_s20 = sshll.u32 %s457_s12, 3  ;;  %v217_v3 = vld [vmem:[%s450_s2] sm:$0xff] }
   0xe   : > { %s202_s23 = scalar_lea.vmem %s448_s0, %s340_s20  ;;  %s213_s28 = scalar_lea.vmem %s451_s3, %s340_s20 }
   0xf   : > { %237 = vmatpush.msra.mxu0 %v215_v1  ;;  %v214_v2 = vld [vmem:[%s202_s23] sm:$0xff] }
  0x10   : > { %342 = vmatmul.msk.f32.vlgmr.msra.gmra.mxu0 %vm218_vm0, %v214_v2 }
  0x8d   : > { %v239_v4 = vpop.f32.mrf.mxu0 }
  0x8e   : > { %v240_v5 = vadd.f32 %v239_v4, %v217_v3 }
  0x90   : > { %243 = vst.msk [vmem:[%s213_s28] sm:$0xff] %vm242_vm1, %v240_v5 }
  0x91 PF: > { %s13_s14 = sadd.s32 1, %s391_s14   ;;  %s452_s12 = smov %s387_s13 }
  0x92   : > { %p10_p5 = scmp.ge.s32.totalorder %s13_s14, 4   ;;  %s453_s13 = smov %s455_s15 }
  0x94   :  { %12 = sbr.rel (!%p10_p5) target bundleno = 2 (0x2), region = 65 }

// kernel: transformer_forward.36
= control target key start
LH: loop header
LB: loop body
LE: loop exit
PB: predicated region body
PF: predicated region fallthrough
CT: control target
= control target key end

     0   :  { %vm24_vm0 = vcmask 261120   ;;  %vm54_vm1 = vcmask 785408   ;;  %s115_s1 = inlined_call_operand.vmem [shape: f32[32,96], index: 1, kind: input, shape index: {}]   ;;  %s116_s2 = inlined_call_operand.vmem [shape: f32[1,96], index: 2, kind: input, shape index: {}]   ;;  %s117_s0 = inlined_call_operand.vmem [shape: f32[16,32], index: 0, kind: input, shape index: {}]   ;;  %s118_s3 = inlined_call_operand.vmem [shape: f32[16,96], index: 3, kind: output, shape index: {}]  }
   0x1   :  { %v19_v0 = vld [vmem:[%s115_s1 + $0x18] sm:$0xff]  ;;  %v18_v1 = vld [vmem:[%s115_s1 + $0x10] sm:$0xff]  ;;  %v17_v2 = vld [vmem:[%s115_s1 + $0x8] sm:$0xff] }
   0x2   :  { %43 = vmatpush.msra.mxu0 %v19_v0  ;;  %63 = vmatpush.msra.mxu1 %v19_v0  ;;  %v16_v3 = vld [vmem:[%s115_s1] sm:$0xff]  ;;  %v15_v5 = vld [vmem:[%s117_s0 + $0x8] sm:$0xff] }
   0x3   :  { %v14_v4 = vld [vmem:[%s117_s0] sm:$0xff] }
   0x4   :  { %44 = vmatpush.msra.mxu0 %v18_v1  ;;  %64 = vmatpush.msra.mxu1 %v18_v1  ;;  %v67_v6 = vld [vmem:[%s116_s2] ss:$0 sm:$0xff] }
   0x6   :  { %45 = vmatpush.msra.mxu0 %v17_v2  ;;  %65 = vmatpush.msra.mxu1 %v17_v2 }
   0x8   :  { %46 = vmatpush.msra.mxu0 %v16_v3  ;;  %66 = vmatpush.msra.mxu1 %v16_v3 }
   0x9   :  { %61 = vmatmul.msk.f32.vlgmr.msra.gmra.mxu0 %vm24_vm0, %v14_v4  ;;  %62 = vmatmul.msk.f32.vlgmr.msra.gmra.mxu1 %vm24_vm0, %v15_v5 }
  0x86   :  { %v48_v7 = vpop.f32.mrf.mxu0  ;;  %v51_v8 = vpop.f32.mrf.mxu1 }
  0x87   :  { %v49_v9 = vadd.f32 %v67_v6, %v48_v7  ;;  %v52_v10 = vadd.f32 %v67_v6, %v51_v8 }
  0x89   :  { %55 = vst.msk [vmem:[%s118_s3] sm:$0xff] %vm54_vm1, %v49_v9 }
  0x8a   :  { %56 = vst.msk [vmem:[%s118_s3 + $0x8] sm:$0xff] %vm54_vm1, %v52_v10 }

// kernel: transformer_forward.39
= control target key start
LH: loop header
LB: loop body
LE: loop exit
PB: predicated region body
PF: predicated region fallthrough
CT: control target
= control target key end

     0   :  { %vm24_vm0 = vcmask 261120   ;;  %s114_s1 = inlined_call_operand.vmem [shape: f32[32,32], index: 1, kind: input, shape index: {}]   ;;  %s115_s2 = inlined_call_operand.vmem [shape: f32[1,32], index: 2, kind: input, shape index: {}]   ;;  %s116_s0 = inlined_call_operand.vmem [shape: f32[16,32], index: 0, kind: input, shape index: {}]   ;;  %s117_s3 = inlined_call_operand.vmem [shape: f32[16,32], index: 3, kind: output, shape index: {}]  }
   0x1   :  { %v19_v0 = vld [vmem:[%s114_s1 + $0x18] sm:$0xff]  ;;  %v18_v1 = vld [vmem:[%s114_s1 + $0x10] sm:$0xff]  ;;  %v17_v2 = vld [vmem:[%s114_s1 + $0x8] sm:$0xff] }
   0x2   :  { %43 = vmatpush.msra.mxu0 %v19_v0  ;;  %62 = vmatpush.msra.mxu1 %v19_v0  ;;  %v16_v3 = vld [vmem:[%s114_s1] sm:$0xff]  ;;  %v15_v5 = vld [vmem:[%s116_s0 + $0x8] sm:$0xff] }
   0x3   :  { %v14_v4 = vld [vmem:[%s116_s0] sm:$0xff] }
   0x4   :  { %44 = vmatpush.msra.mxu0 %v18_v1  ;;  %63 = vmatpush.msra.mxu1 %v18_v1  ;;  %v66_v6 = vld [vmem:[%s115_s2] ss:$0 sm:$0xff] }
   0x6   :  { %45 = vmatpush.msra.mxu0 %v17_v2  ;;  %64 = vmatpush.msra.mxu1 %v17_v2 }
   0x8   :  { %46 = vmatpush.msra.mxu0 %v16_v3  ;;  %65 = vmatpush.msra.mxu1 %v16_v3 }
   0x9   :  { %60 = vmatmul.msk.f32.vlgmr.msra.gmra.mxu0 %vm24_vm0, %v14_v4  ;;  %61 = vmatmul.msk.f32.vlgmr.msra.gmra.mxu1 %vm24_vm0, %v15_v5 }
  0x86   :  { %v48_v7 = vpop.f32.mrf.mxu0  ;;  %v51_v8 = vpop.f32.mrf.mxu1 }
  0x87   :  { %v49_v9 = vadd.f32 %v66_v6, %v48_v7  ;;  %v52_v10 = vadd.f32 %v66_v6, %v51_v8 }
  0x89   :  { %54 = vst.msk [vmem:[%s117_s3] sm:$0xff] %vm24_vm0, %v49_v9 }
  0x8a   :  { %55 = vst.msk [vmem:[%s117_s3 + $0x8] sm:$0xff] %vm24_vm0, %v52_v10 }

// kernel: transformer_forward.37
= control target key start
LH: loop header
LB: loop body
LE: loop exit
PB: predicated region body
PF: predicated region fallthrough
CT: control target
= control target key end

     0   :  { %s540_s12 = smov 0   ;;  %s542_s13 = smov 0   ;;  %s599_s0 = inlined_call_operand.vmem [shape: f32[8,8,8], index: 0, kind: input, shape index: {}]   ;;  %s600_s1 = inlined_call_operand.vmem [shape: f32[8,8,8], index: 1, kind: input, shape index: {}]   ;;  %s601_s2 = inlined_call_operand.vmem [shape: f32[8,8,8], index: 2, kind: input, shape index: {}]   ;;  %s602_s3 = inlined_call_operand.vmem [shape: f32[8,8,8], index: 3, kind: output, shape index: {}]  }
   0x1   :  { %s544_s14 = smov 0  }
   0x2 LB: > { %s25_s15 = sadd.s32 1, %s511_s13  ;;  %p447_p0 = scmp.ge.s32.totalorder %s515_s14, 1  ;;  %s515_s14 = sphi %s544_s14, %s13_s14   ;;  %s511_s13 = sphi %s542_s13, %s604_s13   ;;  %s507_s12 = sphi %s540_s12, %s603_s12  }
   0x3   : > { %p27_p1 = scmp.ge.s32.totalorder %s25_s15, 8  ;;  %p176_p2 = scmp.lt.s32.totalorder %s515_s14, 9 }
   0x5   : > { %s606_s15 = smov (%p27_p1, %s25_s15), 0  ;;  %p177_p3 = pnand %p447_p0, %p176_p2 }
   0x6   : > { %p212_p4 = scmp.lt.s32.totalorder (!%p177_p3), %s507_s12, 7 }
   0x7   : > { %180 = sbr.rel (%p177_p3) target bundleno = 622 (0x26e), region = 32 }
   0xc   : > { %s608_s12 = smov (!%p212_p4, %s507_s12), 7  ;;  %vm241_vm0 = vcmask 64512   ;;  %vm238_vm1 = vcmask 7168   ;;  %v517_v2 = vmov -inf   ;;  %v275_v3 = vlaneseq }
   0xd   : > { %s558_s16 = sshll.u32 %s608_s12, 3  ;;  %239 = vst.msk [vmem:[#allocation2] sm:$0xff] %vm238_vm1, %v517_v2  ;;  %v518_v9 = vmov 0   ;;  %v519_v10 = vmov 0.0  }
   0xe   : > { %s222_s19 = scalar_lea.vmem %s600_s1, %s558_s16  ;;  %s215_s22 = scalar_lea.vmem %s599_s0, %s558_s16  ;;  %v276_v4 = vand.u32 127, %v275_v3  ;;  %484 = vset.pattern.permute.xlu0 %v518_v9  ;;  %485 = vset.pattern.permute.xlu1 %v518_v9  ;;  %240 = vst.msk [vmem:[#allocation3] sm:$0xff] %vm238_vm1, %v519_v10 }
   0xf   : > { %v244_v0 = vld [vmem:[%s222_s19] sm:$0xff]  ;;  %486 = vset.pattern.permute.xlu2 %v518_v9  ;;  %242 = vst.msk [vmem:[#allocation4] sm:$0xff] %vm241_vm0, %v519_v10  ;;  %s229_s25 = scalar_lea.vmem %s601_s2, %s558_s16  ;;  %s233_s28 = scalar_lea.vmem %s602_s3, %s558_s16 }
  0x10   : > { %452 = vmatpush.xpose.msk.msra.mxu0 %vm241_vm0, %v244_v0  ;;  %v243_v1 = vld [vmem:[%s215_s22] sm:$0xff]  ;;  %vm279_vm2 = vcmp.lt.s32.totalorder %v276_v4, 8 }
  0x11   : > { %v245_v15 = vld [vmem:[%s229_s25] sm:$0xff] }
  0x12   : > { %331 = vmatpush.msra.mxu1 %v245_v15 }
  0x13   : > { %453 = vmatmul.msk.f32.vlgmr.msra.gmra.mxu0 %vm241_vm0, %v243_v1 }
  0x14   : > { %v281_v11 = vld [vmem:[#allocation2] sm:$0xff] }
  0x15   : > { %v298_v24 = vld [vmem:[#allocation3] sm:$0xff] }
  0x16   : > { %v306_v30 = vld [vmem:[#allocation4] sm:$0xff] }
  0x90   : > { %v270_v5 = vpop.f32.mrf.mxu0 }
  0x91   : > { %v273_v6 = vmul.f32 0.35355338, %v270_v5 }
  0x93   : > { %v280_v7 = vsel %vm279_vm2, %v273_v6, -1e+30 }
  0x94   : > { %v282_v8 = vsel %vm241_vm0, %v280_v7, -inf }
  0x95   : > { %283 = vmax.xlane.f32.xlu0 %v282_v8 }
 0x108   : > { %v284_v12 = vpop.xlane.xlu0 %283 }
 0x109   : > { %v285_v13 = vmax.f32 %v281_v11, %v284_v12 }
 0x10b   : > { %v286_v14 = vsub.f32 %v281_v11, %v285_v13  ;;  %338 = vst.msk [vmem:[#allocation2] sm:$0xff] %vm238_vm1, %v285_v13  ;;  %291 = vperm.xlu0 %484, %v285_v13  }
 0x10d   : > { %v287_v22 = vmul.f32 1.442695, %v286_v14 }
 0x17d   : > { %v292_v16 = vpop.permute.xlu0 %291 }
 0x17e   : > { %v294_v17 = vsub.f32 %v280_v7, %v292_v16 }
 0x180   : > { %v295_v18 = vmul.f32 1.442695, %v294_v17 }
 0x182   : > { %487 = vpow2.f32 %v295_v18 }
 0x183   : > { %489 = vpow2.f32 %v287_v22 }
 0x188   : > { %v488_v19 = vpop.eup %487 }
 0x189   : > { %v297_v20 = vsel %vm279_vm2, %v488_v19, 0.0  ;;  %v490_v23 = vpop.eup %489 }
 0x18a   : > { %454 = vmatmul.msk.f32.vlgmr.msra.gmra.mxu1 %vm241_vm0, %v297_v20  ;;  %v300_v21 = vsel %vm241_vm0, %v297_v20, 0.0  ;;  %v299_v25 = vmul.f32 %v490_v23, %v298_v24 }
 0x18b   : > { %301 = vadd.xlane.f32.xlu1 %v300_v21 }
 0x1a4   : > { %309 = vperm.xlu1 %485, %v490_v23  }
 0x1fe   : > { %v302_v26 = vpop.xlane.xlu1 %301 }
 0x1ff   : > { %v303_v27 = vadd.f32 %v302_v26, %v299_v25 }
 0x201   : > { %305 = vst.msk [vmem:[#allocation3] sm:$0xff] %vm238_vm1, %v303_v27 }
 0x207   : > { %v333_v33 = vpop.f32.mrf.mxu1 }
 0x208   : > { %v343_v28 = vld [vmem:[#allocation3] sm:$0xff] }
 0x209   : > { %491 = vrcp.f32 %v343_v28 }
 0x20f   : > { %v492_v29 = vpop.eup %491 }
 0x210   : > { %347 = vperm.xlu2 %486, %v492_v29  }
 0x216   : > { %v310_v31 = vpop.permute.xlu1 %309 }
 0x217   : > { %v312_v32 = vmul.f32 %v310_v31, %v306_v30 }
 0x219   : > { %v336_v34 = vadd.f32 %v333_v33, %v312_v32 }
 0x21b   : > { %337 = vst.msk [vmem:[#allocation4] sm:$0xff] %vm241_vm0, %v336_v34 }
 0x222   : > { %v342_v35 = vld [vmem:[#allocation4] sm:$0xff] }
 0x26a   : > { %v348_v36 = vpop.permute.xlu2 %347 }
 0x26b   : > { %v350_v37 = vmul.f32 %v348_v36, %v342_v35 }
 0x26d   : > { %351 = vst.msk [vmem:[%s233_s28] sm:$0xff] %vm241_vm0, %v350_v37 }
 0x26e PF: > { %s13_s14 = sadd.s32 1, %s515_s14   ;;  %s603_s12 = smov %s511_s13 }
 0x26f   : > { %p10_p5 = scmp.ge.s32.totalorder %s13_s14, 10   ;;  %s604_s13 = smov %s606_s15 }
 0x271   :  { %12 = sbr.rel (!%p10_p5) target bundleno = 2 (0x2), region = 76 }

// kernel: transformer_forward.38
= control target key start
LH: loop header
LB: loop body
LE: loop exit
PB: predicated region body
PF: predicated region fallthrough
CT: control target
= control target key end

     0   :  { %vm33_vm0 = vcmask 261120   ;;  %v152_v17 = vmov 32.0   ;;  %s235_s2 = inlined_call_operand.vmem [shape: f32[32,32], index: 2, kind: input, shape index: {}]   ;;  %s236_s3 = inlined_call_operand.vmem [shape: f32[1,32], index: 3, kind: input, shape index: {}]   ;;  %s237_s0 = inlined_call_operand.vmem [shape: f32[16,32], index: 0, kind: input, shape index: {}]   ;;  %s238_s1 = inlined_call_operand.vmem [shape: f32[16,32], index: 1, kind: input, shape index: {}]   ;;  %s239_s4 = inlined_call_operand.vmem [shape: f32[1,32], index: 4, kind: input, shape index: {}]   ;;  %s240_s5 = inlined_call_operand.vmem [shape: f32[1,32], index: 5, kind: input, shape index: {}]   ;;  %s241_s6 = inlined_call_operand.vmem [shape: f32[16,32], index: 6, kind: output, shape index: {}]  }
   0x1   :  { %v28_v0 = vld [vmem:[%s235_s2 + $0x18] sm:$0xff]  ;;  %v27_v1 = vld [vmem:[%s235_s2 + $0x10] sm:$0xff]  ;;  %v26_v2 = vld [vmem:[%s235_s2 + $0x8] sm:$0xff]  ;;  %146 = vrcp.f32 %v152_v17 }
   0x2   :  { %52 = vmatpush.msra.mxu0 %v28_v0  ;;  %138 = vmatpush.msra.mxu1 %v28_v0  ;;  %v25_v3 = vld [vmem:[%s235_s2] sm:$0xff]  ;;  %v24_v5 = vld [vmem:[%s237_s0 + $0x8] sm:$0xff] }
   0x3   :  { %v23_v4 = vld [vmem:[%s237_s0] sm:$0xff]  ;;  %v64_v13 = vld [vmem:[%s238_s1 + $0x8] sm:$0xff] }
   0x4   :  { %53 = vmatpush.msra.mxu0 %v27_v1  ;;  %139 = vmatpush.msra.mxu1 %v27_v1  ;;  %v143_v6 = vld [vmem:[%s236_s3] ss:$0 sm:$0xff] }
   0x5   :  { %v63_v8 = vld [vmem:[%s238_s1] sm:$0xff] }
   0x6   :  { %54 = vmatpush.msra.mxu0 %v26_v2  ;;  %140 = vmatpush.msra.mxu1 %v26_v2  ;;  %v144_v48 = vld [vmem:[%s239_s4] ss:$0 sm:$0xff] }
   0x7   :  { %v147_v18 = vpop.eup %146  ;;  %v145_v51 = vld [vmem:[%s240_s5] ss:$0 sm:$0xff] }
   0x8   :  { %55 = vmatpush.msra.mxu0 %v25_v3  ;;  %141 = vmatpush.msra.mxu1 %v25_v3  ;;  %v74_v19 = vmul.f32 32.0, %v147_v18  ;;  %vm78_vm1 = vweird.f32 %v147_v18 }
   0x9   :  { %136 = vmatmul.msk.f32.vlgmr.msra.gmra.mxu0 %vm33_vm0, %v23_v4  ;;  %137 = vmatmul.msk.f32.vlgmr.msra.gmra.mxu1 %vm33_vm0, %v24_v5 }
   0xa   :  { %v75_v20 = vsub.f32 1.0, %v74_v19 }
   0xc   :  { %v76_v21 = vmul.f32 %v147_v18, %v75_v20 }
   0xe   :  { %v77_v22 = vadd.f32 %v147_v18, %v76_v21 }
  0x10   :  { %v79_v23 = vsel %vm78_vm1, %v147_v18, %v77_v22 }
  0x86   :  { %v57_v7 = vpop.f32.mrf.mxu0  ;;  %v60_v9 = vpop.f32.mrf.mxu1 }
  0x87   :  { %v58_v10 = vadd.f32 %v143_v6, %v57_v7  ;;  %v61_v12 = vadd.f32 %v143_v6, %v60_v9 }
  0x89   :  { %v65_v11 = vadd.f32 %v63_v8, %v58_v10  ;;  %v66_v15 = vadd.f32 %v64_v13, %v61_v12 }
  0x8b   :  { %v67_v14 = vsel %vm33_vm0, %v65_v11, 0.0  ;;  %v70_v16 = vsel %vm33_vm0, %v66_v15, 0.0 }
  0x8c   :  { %68 = vadd.xlane.f32.xlu0 %v67_v14 }
  0x94   :  { %71 = vadd.xlane.f32.xlu0 %v70_v16 }
  0xff   :  { %v69_v24 = vpop.xlane.xlu0 %68 }
 0x100   :  { %v80_v25 = vmul.f32 %v79_v23, %v69_v24 }
 0x102   :  { %v82_v26 = vsub.f32 %v65_v11, %v80_v25 }
 0x104   :  { %v84_v27 = vmul.f32 %v82_v26, %v82_v26 }
 0x106   :  { %v86_v28 = vsel %vm33_vm0, %v84_v27, 0.0 }
 0x107   :  { %87 = vadd.xlane.f32.xlu1 %v86_v28  ;;  %v72_v29 = vpop.xlane.xlu0 %71 }
 0x108   :  { %v81_v30 = vmul.f32 %v79_v23, %v72_v29 }
 0x10a   :  { %v83_v31 = vsub.f32 %v66_v15, %v81_v30 }
 0x10c   :  { %v85_v32 = vmul.f32 %v83_v31, %v83_v31 }
 0x10e   :  { %v89_v33 = vsel %vm33_vm0, %v85_v32, 0.0 }
 0x10f   :  { %90 = vadd.xlane.f32.xlu1 %v89_v33 }
 0x17a   :  { %v88_v34 = vpop.xlane.xlu1 %87 }
 0x17b   :  { %v92_v35 = vmul.f32 %v88_v34, %v79_v23 }
 0x17d   :  { %v94_v36 = vadd.f32 1e-05, %v92_v35 }
 0x17f   :  { %148 = vrsqrt.f32 %v94_v36  ;;  %vm102_vm3 = vweird.f32 %v94_v36 }
 0x182   :  { %v91_v37 = vpop.xlane.xlu1 %90 }
 0x183   :  { %v93_v38 = vmul.f32 %v91_v37, %v79_v23 }
 0x185   :  { %v149_v39 = vpop.eup %148  ;;  %v95_v40 = vadd.f32 1e-05, %v93_v38 }
 0x186   :  { %v97_v41 = vmul.f32 %v149_v39, %v94_v36  ;;  %vm103_vm2 = vweird.f32 %v149_v39 }
 0x187   :  { %150 = vrsqrt.f32 %v95_v40  ;;  %vm104_vm4 = vmor %vm102_vm3, %vm103_vm2  ;;  %vm112_vm6 = vweird.f32 %v95_v40 }
 0x188   :  { %v98_v42 = vmul.f32 %v149_v39, %v97_v41 }
 0x18a   :  { %v99_v43 = vmul.f32 0.5, %v98_v42 }
 0x18c   :  { %v100_v44 = vsub.f32 1.5, %v99_v43 }
 0x18d   :  { %v151_v45 = vpop.eup %150 }
 0x18e   :  { %v101_v46 = vmul.f32 %v149_v39, %v100_v44  ;;  %v107_v47 = vmul.f32 %v151_v45, %v95_v40  ;;  %vm113_vm5 = vweird.f32 %v151_v45 }
 0x18f   :  { %vm114_vm7 = vmor %vm112_vm6, %vm113_vm5 }
 0x190   :  { %v105_v49 = vsel %vm104_vm4, %v149_v39, %v101_v46  ;;  %v108_v50 = vmul.f32 %v151_v45, %v107_v47 }
 0x191   :  { %v116_v52 = vmul.f32 %v105_v49, %v82_v26 }
 0x192   :  { %v109_v53 = vmul.f32 0.5, %v108_v50 }
 0x193   :  { %v122_v54 = vmul.f32 %v144_v48, %v116_v52 }
 0x194   :  { %v110_v55 = vsub.f32 1.5, %v109_v53 }
 0x195   :  { %v128_v56 = vadd.f32 %v145_v51, %v122_v54 }
 0x196   :  { %v111_v57 = vmul.f32 %v151_v45, %v110_v55 }
 0x197   :  { %130 = vst.msk [vmem:[%s241_s6] sm:$0xff] %vm33_vm0, %v128_v56 }
 0x198   :  { %v115_v58 = vsel %vm114_vm7, %v151_v45, %v111_v57 }
 0x199   :  { %v117_v59 = vmul.f32 %v115_v58, %v83_v31 }
 0x19b   :  { %v123_v60 = vmul.f32 %v144_v48, %v117_v59 }
 0x19d   :  { %v129_v61 = vadd.f32 %v145_v51, %v123_v60 }
 0x19f   :  { %131 = vst.msk [vmem:[%s241_s6 + $0x8] sm:$0xff] %vm33_vm0, %v129_v61 }

// kernel: transformer_forward.31
= control target key start
LH: loop header
LB: loop body
LE: loop exit
PB: predicated region body
PF: predicated region fallthrough
CT: control target
= control target key end

     0   :  { %vm36_vm0 = vcmask 261120   ;;  %vm80_vm1 = vcmask 523264   ;;  %v208_v30 = vmov 32.0   ;;  %s317_s1 = inlined_call_operand.vmem [shape: f32[32,64], index: 1, kind: input, shape index: {}]   ;;  %s318_s3 = inlined_call_operand.vmem [shape: f32[64,32], index: 3, kind: input, shape index: {}]   ;;  %s319_s0 = inlined_call_operand.vmem [shape: f32[16,32], index: 0, kind: input, shape index: {}]   ;;  %s320_s2 = inlined_call_operand.vmem [shape: f32[1,64], index: 2, kind: input, shape index: {}]   ;;  %s321_s4 = inlined_call_operand.vmem [shape: f32[1,32], index: 4, kind: input, shape index: {}]   ;;  %s322_s5 = inlined_call_operand.vmem [shape: f32[1,32], index: 5, kind: input, shape index: {}]   ;;  %s323_s6 = inlined_call_operand.vmem [shape: f32[1,32], index: 6, kind: input, shape index: {}]   ;;  %s324_s7 = inlined_call_operand.vmem [shape: f32[16,32], index: 7, kind: output, shape index: {}]  }
   0x1   :  { %v31_v0 = vld [vmem:[%s317_s1 + $0x18] sm:$0xff]  ;;  %v30_v1 = vld [vmem:[%s317_s1 + $0x10] sm:$0xff]  ;;  %v29_v2 = vld [vmem:[%s317_s1 + $0x8] sm:$0xff]  ;;  %202 = vrcp.f32 %v208_v30 }
   0x2   :  { %55 = vmatpush.msra.mxu0 %v31_v0  ;;  %185 = vmatpush.msra.mxu3 %v31_v0  ;;  %v75_v3 = vld [vmem:[%s318_s3 + $0x38] sm:$0xff]  ;;  %v74_v4 = vld [vmem:[%s318_s3 + $0x30] sm:$0xff]  ;;  %v28_v5 = vld [vmem:[%s317_s1] sm:$0xff] }
   0x3   :  { %95 = vmatpush.msra.mxu1 %v75_v3  ;;  %189 = vmatpush.msra.mxu2 %v75_v3  ;;  %v26_v6 = vld [vmem:[%s319_s0] sm:$0xff]  ;;  %v27_v7 = vld [vmem:[%s319_s0 + $0x8] sm:$0xff]  ;;  %v71_v10 = vld [vmem:[%s318_s3 + $0x18] sm:$0xff] }
   0x4   :  { %56 = vmatpush.msra.mxu0 %v30_v1  ;;  %186 = vmatpush.msra.mxu3 %v30_v1  ;;  %v73_v8 = vld [vmem:[%s318_s3 + $0x28] sm:$0xff]  ;;  %v72_v9 = vld [vmem:[%s318_s3 + $0x20] sm:$0xff]  ;;  %v70_v11 = vld [vmem:[%s318_s3 + $0x10] sm:$0xff] }
   0x5   :  { %96 = vmatpush.msra.mxu1 %v74_v4  ;;  %190 = vmatpush.msra.mxu2 %v74_v4  ;;  %v69_v12 = vld [vmem:[%s318_s3 + $0x8] sm:$0xff]  ;;  %v68_v13 = vld [vmem:[%s318_s3] sm:$0xff] }
   0x6   :  { %57 = vmatpush.msra.mxu0 %v29_v2  ;;  %187 = vmatpush.msra.mxu3 %v29_v2  ;;  %v198_v14 = vld [vmem:[%s320_s2] ss:$0 sm:$0xff] }
   0x7   :  { %97 = vmatpush.msra.mxu1 %v73_v8  ;;  %191 = vmatpush.msra.mxu2 %v73_v8  ;;  %v199_v21 = vld [vmem:[%s321_s4] ss:$0 sm:$0xff]  ;;  %v203_v31 = vpop.eup %202 }
   0x8   :  { %58 = vmatpush.msra.mxu0 %v28_v5  ;;  %188 = vmatpush.msra.mxu3 %v28_v5  ;;  %v119_v32 = vmul.f32 32.0, %v203_v31  ;;  %vm123_vm2 = vweird.f32 %v203_v31  ;;  %v200_v59 = vld [vmem:[%s322_s5] ss:$0 sm:$0xff] }
   0x9   :  { %181 = vmatmul.msk.f32.vlgmr.msra.gmra.mxu0 %vm36_vm0, %v26_v6  ;;  %182 = vmatmul.msk.f32.vlgmr.msra.gmra.mxu3 %vm36_vm0, %v27_v7  ;;  %v201_v62 = vld [vmem:[%s323_s6] ss:$0 sm:$0xff] }
   0xa   :  { %98 = vmatpush.msra.mxu1 %v72_v9  ;;  %192 = vmatpush.msra.mxu2 %v72_v9  ;;  %v120_v33 = vsub.f32 1.0, %v119_v32 }
   0xc   :  { %99 = vmatpush.msra.mxu1 %v71_v10  ;;  %193 = vmatpush.msra.mxu2 %v71_v10  ;;  %v121_v34 = vmul.f32 %v203_v31, %v120_v33 }
   0xe   :  { %100 = vmatpush.msra.mxu1 %v70_v11  ;;  %194 = vmatpush.msra.mxu2 %v70_v11  ;;  %v122_v35 = vadd.f32 %v203_v31, %v121_v34 }
  0x10   :  { %101 = vmatpush.msra.mxu1 %v69_v12  ;;  %195 = vmatpush.msra.mxu2 %v69_v12  ;;  %v124_v36 = vsel %vm123_vm2, %v203_v31, %v122_v35 }
  0x12   :  { %102 = vmatpush.msra.mxu1 %v68_v13  ;;  %196 = vmatpush.msra.mxu2 %v68_v13 }
  0x86   :  { %v60_v15 = vpop.f32.mrf.mxu0 }
  0x87   :  { %v61_v16 = vadd.f32 %v198_v14, %v60_v15 }
  0x89   :  { %v66_v17 = vmax.f32 %v61_v16, 0.0 }
  0x8b   :  { %183 = vmatmul.msk.f32.vlgmr.msra.gmra.mxu1 %vm80_vm1, %v66_v17 }
  0x8c   :  { %v63_v18 = vpop.f32.mrf.mxu3 }
  0x8d   :  { %v64_v19 = vadd.f32 %v198_v14, %v63_v18 }
  0x8f   :  { %v67_v20 = vmax.f32 %v64_v19, 0.0 }
  0x91   :  { %184 = vmatmul.msk.f32.vlgmr.msra.gmra.mxu2 %vm80_vm1, %v67_v20 }
 0x108   :  { %v104_v22 = vpop.f32.mrf.mxu1 }
 0x109   :  { %v105_v23 = vadd.f32 %v199_v21, %v104_v22 }
 0x10b   :  { %v110_v24 = vadd.f32 %v105_v23, %v26_v6 }
 0x10d   :  { %v112_v25 = vsel %vm36_vm0, %v110_v24, 0.0 }
 0x10e   :  { %113 = vadd.xlane.f32.xlu0 %v112_v25 }
 0x114   :  { %v107_v26 = vpop.f32.mrf.mxu2 }
 0x115   :  { %v108_v27 = vadd.f32 %v199_v21, %v107_v26 }
 0x117   :  { %v111_v28 = vadd.f32 %v108_v27, %v27_v7 }
 0x119   :  { %v115_v29 = vsel %vm36_vm0, %v111_v28, 0.0 }
 0x11a   :  { %116 = vadd.xlane.f32.xlu0 %v115_v29 }
 0x181   :  { %v114_v37 = vpop.xlane.xlu0 %113 }
 0x182   :  { %v125_v38 = vmul.f32 %v124_v36, %v114_v37 }
 0x184   :  { %v127_v39 = vsub.f32 %v110_v24, %v125_v38 }
 0x186   :  { %v129_v40 = vmul.f32 %v127_v39, %v127_v39 }
 0x188   :  { %v131_v41 = vsel %vm36_vm0, %v129_v40, 0.0 }
 0x189   :  { %132 = vadd.xlane.f32.xlu1 %v131_v41 }
 0x18d   :  { %v117_v42 = vpop.xlane.xlu0 %116 }
 0x18e   :  { %v126_v43 = vmul.f32 %v124_v36, %v117_v42 }
 0x190   :  { %v128_v44 = vsub.f32 %v111_v28, %v126_v43 }
 0x192   :  { %v130_v45 = vmul.f32 %v128_v44, %v128_v44 }
 0x194   :  { %v134_v46 = vsel %vm36_vm0, %v130_v45, 0.0 }
 0x195   :  { %135 = vadd.xlane.f32.xlu1 %v134_v46 }
 0x1fc   :  { %v133_v47 = vpop.xlane.xlu1 %132 }
 0x1fd   :  { %v137_v48 = vmul.f32 %v133_v47, %v124_v36 }
 0x1ff   :  { %v139_v49 = vadd.f32 1e-05, %v137_v48 }
 0x201   :  { %204 = vrsqrt.f32 %v139_v49  ;;  %vm147_vm4 = vweird.f32 %v139_v49 }
 0x207   :  { %v205_v50 = vpop.eup %204 }
 0x208   :  { %v142_v51 = vmul.f32 %v205_v50, %v139_v49  ;;  %v136_v52 = vpop.xlane.xlu1 %135  ;;  %vm148_vm3 = vweird.f32 %v205_v50 }
 0x209   :  { %v138_v53 = vmul.f32 %v136_v52, %v124_v36  ;;  %vm149_vm5 = vmor %vm147_vm4, %vm148_vm3 }
 0x20a   :  { %v143_v54 = vmul.f32 %v205_v50, %v142_v51 }
 0x20b   :  { %v140_v55 = vadd.f32 1e-05, %v138_v53 }
 0x20c   :  { %v144_v56 = vmul.f32 0.5, %v143_v54 }
 0x20d   :  { %206 = vrsqrt.f32 %v140_v55  ;;  %vm157_vm7 = vweird.f32 %v140_v55 }
 0x20e   :  { %v145_v57 = vsub.f32 1.5, %v144_v56 }
 0x210   :  { %v146_v58 = vmul.f32 %v205_v50, %v145_v57 }
 0x212   :  { %v150_v60 = vsel %vm149_vm5, %v205_v50, %v146_v58 }
 0x213   :  { %v207_v61 = vpop.eup %206  ;;  %v161_v63 = vmul.f32 %v150_v60, %v127_v39 }
 0x214   :  { %v152_v0 = vmul.f32 %v207_v61, %v140_v55  ;;  %vm158_vm6 = vweird.f32 %v207_v61 }
 0x215   :  { %v167_v1 = vmul.f32 %v200_v59, %v161_v63  ;;  %vm159_vm8 = vmor %vm157_vm7, %vm158_vm6 }
 0x216   :  { %v153_v2 = vmul.f32 %v207_v61, %v152_v0 }
 0x217   :  { %v173_v3 = vadd.f32 %v201_v62, %v167_v1 }
 0x218   :  { %v154_v4 = vmul.f32 0.5, %v153_v2 }
 0x219   :  { %175 = vst.msk [vmem:[%s324_s7] sm:$0xff] %vm36_vm0, %v173_v3 }
 0x21a   :  { %v155_v5 = vsub.f32 1.5, %v154_v4 }
 0x21c   :  { %v156_v6 = vmul.f32 %v207_v61, %v155_v5 }
 0x21e   :  { %v160_v7 = vsel %vm159_vm8, %v207_v61, %v156_v6 }
 0x21f   :  { %v162_v8 = vmul.f32 %v160_v7, %v128_v44 }
 0x221   :  { %v168_v9 = vmul.f32 %v200_v59, %v162_v8 }
 0x223   :  { %v174_v10 = vadd.f32 %v201_v62, %v168_v9 }
 0x225   :  { %176 = vst.msk [vmem:[%s324_s7 + $0x8] sm:$0xff] %vm36_vm0, %v174_v10 }

// kernel: transformer_forward.40
= control target key start
LH: loop header
LB: loop body
LE: loop exit
PB: predicated region body
PF: predicated region fallthrough
CT: control target
= control target key end

     0   :  { %vm24_vm0 = vcmask 261120   ;;  %vm54_vm1 = vcmask 523264   ;;  %s115_s1 = inlined_call_operand.vmem [shape: f32[32,64], index: 1, kind: input, shape index: {}]   ;;  %s116_s2 = inlined_call_operand.vmem [shape: f32[1,64], index: 2, kind: input, shape index: {}]   ;;  %s117_s0 = inlined_call_operand.vmem [shape: f32[16,32], index: 0, kind: input, shape index: {}]   ;;  %s118_s3 = inlined_call_operand.vmem [shape: f32[16,64], index: 3, kind: output, shape index: {}]  }
   0x1   :  { %v19_v0 = vld [vmem:[%s115_s1 + $0x18] sm:$0xff]  ;;  %v18_v1 = vld [vmem:[%s115_s1 + $0x10] sm:$0xff]  ;;  %v17_v2 = vld [vmem:[%s115_s1 + $0x8] sm:$0xff] }
   0x2   :  { %43 = vmatpush.msra.mxu0 %v19_v0  ;;  %63 = vmatpush.msra.mxu1 %v19_v0  ;;  %v16_v3 = vld [vmem:[%s115_s1] sm:$0xff]  ;;  %v15_v5 = vld [vmem:[%s117_s0 + $0x8] sm:$0xff] }
   0x3   :  { %v14_v4 = vld [vmem:[%s117_s0] sm:$0xff] }
   0x4   :  { %44 = vmatpush.msra.mxu0 %v18_v1  ;;  %64 = vmatpush.msra.mxu1 %v18_v1  ;;  %v67_v6 = vld [vmem:[%s116_s2] ss:$0 sm:$0xff] }
   0x6   :  { %45 = vmatpush.msra.mxu0 %v17_v2  ;;  %65 = vmatpush.msra.mxu1 %v17_v2 }
   0x8   :  { %46 = vmatpush.msra.mxu0 %v16_v3  ;;  %66 = vmatpush.msra.mxu1 %v16_v3 }
   0x9   :  { %61 = vmatmul.msk.f32.vlgmr.msra.gmra.mxu0 %vm24_vm0, %v14_v4  ;;  %62 = vmatmul.msk.f32.vlgmr.msra.gmra.mxu1 %vm24_vm0, %v15_v5 }
  0x86   :  { %v48_v7 = vpop.f32.mrf.mxu0  ;;  %v51_v8 = vpop.f32.mrf.mxu1 }
  0x87   :  { %v49_v9 = vadd.f32 %v67_v6, %v48_v7  ;;  %v52_v10 = vadd.f32 %v67_v6, %v51_v8 }
  0x89   :  { %55 = vst.msk [vmem:[%s118_s3] sm:$0xff] %vm54_vm1, %v49_v9 }
  0x8a   :  { %56 = vst.msk [vmem:[%s118_s3 + $0x8] sm:$0xff] %vm54_vm1, %v52_v10 }

// kernel: transformer_forward.51
= control target key start
LH: loop header
LB: loop body
LE: loop exit
PB: predicated region body
PF: predicated region fallthrough
CT: control target
= control target key end

     0   :  { %vm44_vm0 = vcmask 261120   ;;  %vm88_vm1 = vcmask 523264   ;;  %v237_v30 = vmov 32.0   ;;  %vm201_vm9 = vcmask 7168   ;;  %s362_s1 = inlined_call_operand.vmem [shape: f32[32,64], index: 1, kind: input, shape index: {}]   ;;  %s363_s3 = inlined_call_operand.vmem [shape: f32[64,32], index: 3, kind: input, shape index: {}]   ;;  %s364_s0 = inlined_call_operand.vmem [shape: f32[16,32], index: 0, kind: input, shape index: {}]   ;;  %s365_s2 = inlined_call_operand.vmem [shape: f32[1,64], index: 2, kind: input, shape index: {}]   ;;  %s366_s4 = inlined_call_operand.vmem [shape: f32[1,32], index: 4, kind: input, shape index: {}]   ;;  %s367_s5 = inlined_call_operand.vmem [shape: f32[1,32], index: 5, kind: input, shape index: {}]   ;;  %s368_s6 = inlined_call_operand.vmem [shape: f32[1,32], index: 6, kind: input, shape index: {}]   ;;  %s369_s7 = inlined_call_operand.vmem [shape: f32[1,32], index: 7, kind: input, shape index: {}]   ;;  %s370_s8 = inlined_call_operand.<no memory space> [shape: f32[1,1], index: 8, kind: input, shape index: {}]   ;;  %s371_s9 = inlined_call_operand.vmem [shape: f32[16,1], index: 9, kind: output, shape index: {}]  }
   0x1   :  { %v39_v0 = vld [vmem:[%s362_s1 + $0x18] sm:$0xff]  ;;  %v38_v1 = vld [vmem:[%s362_s1 + $0x10] sm:$0xff]  ;;  %v37_v2 = vld [vmem:[%s362_s1 + $0x8] sm:$0xff]  ;;  %231 = vrcp.f32 %v237_v30  ;;  %v14_v53 = vstv %s370_s8 }
   0x2   :  { %63 = vmatpush.msra.mxu0 %v39_v0  ;;  %212 = vmatpush.msra.mxu3 %v39_v0  ;;  %v83_v3 = vld [vmem:[%s363_s3 + $0x38] sm:$0xff]  ;;  %v82_v4 = vld [vmem:[%s363_s3 + $0x30] sm:$0xff]  ;;  %v36_v5 = vld [vmem:[%s362_s1] sm:$0xff]  ;;  %15 = vst [vmem:[#allocation2] sm:$0x1] %v14_v53 }
   0x3   :  { %103 = vmatpush.msra.mxu1 %v83_v3  ;;  %216 = vmatpush.msra.mxu2 %v83_v3  ;;  %v34_v6 = vld [vmem:[%s364_s0] sm:$0xff]  ;;  %v35_v7 = vld [vmem:[%s364_s0 + $0x8] sm:$0xff]  ;;  %v79_v10 = vld [vmem:[%s363_s3 + $0x18] sm:$0xff] }
   0x4   :  { %64 = vmatpush.msra.mxu0 %v38_v1  ;;  %213 = vmatpush.msra.mxu3 %v38_v1  ;;  %v81_v8 = vld [vmem:[%s363_s3 + $0x28] sm:$0xff]  ;;  %v80_v9 = vld [vmem:[%s363_s3 + $0x20] sm:$0xff]  ;;  %v78_v11 = vld [vmem:[%s363_s3 + $0x10] sm:$0xff] }
   0x5   :  { %104 = vmatpush.msra.mxu1 %v82_v4  ;;  %217 = vmatpush.msra.mxu2 %v82_v4  ;;  %v77_v12 = vld [vmem:[%s363_s3 + $0x8] sm:$0xff]  ;;  %v76_v13 = vld [vmem:[%s363_s3] sm:$0xff] }
   0x6   :  { %65 = vmatpush.msra.mxu0 %v37_v2  ;;  %214 = vmatpush.msra.mxu3 %v37_v2  ;;  %v225_v14 = vld [vmem:[%s365_s2] ss:$0 sm:$0xff] }
   0x7   :  { %105 = vmatpush.msra.mxu1 %v81_v8  ;;  %218 = vmatpush.msra.mxu2 %v81_v8  ;;  %v226_v21 = vld [vmem:[%s366_s4] ss:$0 sm:$0xff]  ;;  %v232_v31 = vpop.eup %231 }
   0x8   :  { %66 = vmatpush.msra.mxu0 %v36_v5  ;;  %215 = vmatpush.msra.mxu3 %v36_v5  ;;  %v127_v32 = vmul.f32 32.0, %v232_v31  ;;  %vm131_vm2 = vweird.f32 %v232_v31  ;;  %v227_v60 = vld [vmem:[%s367_s5] ss:$0 sm:$0xff] }
   0x9   :  { %208 = vmatmul.msk.f32.vlgmr.msra.gmra.mxu0 %vm44_vm0, %v34_v6  ;;  %209 = vmatmul.msk.f32.vlgmr.msra.gmra.mxu3 %vm44_vm0, %v35_v7  ;;  %v228_v0 = vld [vmem:[%s368_s6] ss:$0 sm:$0xff] }
   0xa   :  { %106 = vmatpush.msra.mxu1 %v80_v9  ;;  %219 = vmatpush.msra.mxu2 %v80_v9  ;;  %v128_v33 = vsub.f32 1.0, %v127_v32  ;;  %v229_v3 = vld [vmem:[%s369_s7] ss:$0 sm:$0xff] }
   0xc   :  { %107 = vmatpush.msra.mxu1 %v79_v10  ;;  %220 = vmatpush.msra.mxu2 %v79_v10  ;;  %v129_v34 = vmul.f32 %v232_v31, %v128_v33 }
   0xe   :  { %108 = vmatpush.msra.mxu1 %v78_v11  ;;  %221 = vmatpush.msra.mxu2 %v78_v11  ;;  %v130_v35 = vadd.f32 %v232_v31, %v129_v34 }
  0x10   :  { %109 = vmatpush.msra.mxu1 %v77_v12  ;;  %222 = vmatpush.msra.mxu2 %v77_v12  ;;  %v132_v36 = vsel %vm131_vm2, %v232_v31, %v130_v35 }
  0x12   :  { %110 = vmatpush.msra.mxu1 %v76_v13  ;;  %223 = vmatpush.msra.mxu2 %v76_v13 }
  0x86   :  { %v68_v15 = vpop.f32.mrf.mxu0 }
  0x87   :  { %v69_v16 = vadd.f32 %v225_v14, %v68_v15 }
  0x89   :  { %v74_v17 = vmax.f32 %v69_v16, 0.0 }
  0x8b   :  { %210 = vmatmul.msk.f32.vlgmr.msra.gmra.mxu1 %vm88_vm1, %v74_v17  ;;  %v230_v17 = vld [vmem:[#allocation2] ss:$0 sm:$0xff] }
  0x8c   :  { %v71_v18 = vpop.f32.mrf.mxu3 }
  0x8d   :  { %v72_v19 = vadd.f32 %v225_v14, %v71_v18 }
  0x8f   :  { %v75_v20 = vmax.f32 %v72_v19, 0.0 }
  0x91   :  { %211 = vmatmul.msk.f32.vlgmr.msra.gmra.mxu2 %vm88_vm1, %v75_v20 }
 0x108   :  { %v112_v22 = vpop.f32.mrf.mxu1 }
 0x109   :  { %v113_v23 = vadd.f32 %v226_v21, %v112_v22 }
 0x10b   :  { %v118_v24 = vadd.f32 %v113_v23, %v34_v6 }
 0x10d   :  { %v120_v25 = vsel %vm44_vm0, %v118_v24, 0.0 }
 0x10e   :  { %121 = vadd.xlane.f32.xlu0 %v120_v25 }
 0x114   :  { %v115_v26 = vpop.f32.mrf.mxu2 }
 0x115   :  { %v116_v27 = vadd.f32 %v226_v21, %v115_v26 }
 0x117   :  { %v119_v28 = vadd.f32 %v116_v27, %v35_v7 }
 0x119   :  { %v123_v29 = vsel %vm44_vm0, %v119_v28, 0.0 }
 0x11a   :  { %124 = vadd.xlane.f32.xlu0 %v123_v29 }
 0x181   :  { %v122_v37 = vpop.xlane.xlu0 %121 }
 0x182   :  { %v133_v38 = vmul.f32 %v132_v36, %v122_v37 }
 0x184   :  { %v135_v39 = vsub.f32 %v118_v24, %v133_v38 }
 0x186   :  { %v137_v40 = vmul.f32 %v135_v39, %v135_v39 }
 0x188   :  { %v139_v41 = vsel %vm44_vm0, %v137_v40, 0.0 }
 0x189   :  { %140 = vadd.xlane.f32.xlu1 %v139_v41 }
 0x18d   :  { %v125_v42 = vpop.xlane.xlu0 %124 }
 0x18e   :  { %v134_v43 = vmul.f32 %v132_v36, %v125_v42 }
 0x190   :  { %v136_v44 = vsub.f32 %v119_v28, %v134_v43 }
 0x192   :  { %v138_v45 = vmul.f32 %v136_v44, %v136_v44 }
 0x194   :  { %v142_v46 = vsel %vm44_vm0, %v138_v45, 0.0 }
 0x195   :  { %143 = vadd.xlane.f32.xlu1 %v142_v46 }
 0x1fc   :  { %v141_v47 = vpop.xlane.xlu1 %140 }
 0x1fd   :  { %v145_v48 = vmul.f32 %v141_v47, %v132_v36 }
 0x1ff   :  { %v147_v49 = vadd.f32 1e-05, %v145_v48 }
 0x201   :  { %233 = vrsqrt.f32 %v147_v49  ;;  %vm155_vm4 = vweird.f32 %v147_v49 }
 0x207   :  { %v234_v50 = vpop.eup %233 }
 0x208   :  { %v150_v51 = vmul.f32 %v234_v50, %v147_v49  ;;  %v144_v52 = vpop.xlane.xlu1 %143  ;;  %vm156_vm3 = vweird.f32 %v234_v50 }
 0x209   :  { %v146_v54 = vmul.f32 %v144_v52, %v132_v36  ;;  %vm157_vm5 = vmor %vm155_vm4, %vm156_vm3 }
 0x20a   :  { %v151_v55 = vmul.f32 %v234_v50, %v150_v51 }
 0x20b   :  { %v148_v56 = vadd.f32 1e-05, %v146_v54 }
 0x20c   :  { %v152_v57 = vmul.f32 0.5, %v151_v55 }
 0x20d   :  { %235 = vrsqrt.f32 %v148_v56  ;;  %vm165_vm7 = vweird.f32 %v148_v56 }
 0x20e   :  { %v153_v58 = vsub.f32 1.5, %v152_v57 }
 0x210   :  { %v154_v59 = vmul.f32 %v234_v50, %v153_v58 }
 0x212   :  { %v158_v61 = vsel %vm157_vm5, %v234_v50, %v154_v59 }
 0x213   :  { %v236_v62 = vpop.eup %235  ;;  %v169_v63 = vmul.f32 %v158_v61, %v135_v39 }
 0x214   :  { %v160_v1 = vmul.f32 %v236_v62, %v148_v56  ;;  %vm166_vm6 = vweird.f32 %v236_v62 }
 0x215   :  { %v175_v2 = vmul.f32 %v227_v60, %v169_v63  ;;  %vm167_vm8 = vmor %vm165_vm7, %vm166_vm6 }
 0x216   :  { %v161_v4 = vmul.f32 %v236_v62, %v160_v1 }
 0x217   :  { %v181_v5 = vadd.f32 %v228_v0, %v175_v2 }
 0x218   :  { %v162_v6 = vmul.f32 0.5, %v161_v4 }
 0x219   :  { %v187_v7 = vmul.f32 %v229_v3, %v181_v5 }
 0x21a   :  { %v163_v8 = vsub.f32 1.5, %v162_v6 }
 0x21b   :  { %v189_v9 = vsel %vm44_vm0, %v187_v7, 0.0 }
 0x21c   :  { %v164_v10 = vmul.f32 %v236_v62, %v163_v8  ;;  %190 = vadd.xlane.f32.xlu2 %v189_v9 }
 0x21e   :  { %v168_v11 = vsel %vm167_vm8, %v236_v62, %v164_v10 }
 0x21f   :  { %v170_v12 = vmul.f32 %v168_v11, %v136_v44 }
 0x221   :  { %v176_v13 = vmul.f32 %v227_v60, %v170_v12 }
 0x223   :  { %v182_v14 = vadd.f32 %v228_v0, %v176_v13 }
 0x225   :  { %v188_v15 = vmul.f32 %v229_v3, %v182_v14 }
 0x227   :  { %v192_v16 = vsel %vm44_vm0, %v188_v15, 0.0 }
 0x228   :  { %193 = vadd.xlane.f32.xlu2 %v192_v16 }
 0x28f   :  { %v191_v18 = vpop.xlane.xlu2 %190 }
 0x290   :  { %v199_v19 = vadd.f32 %v230_v17, %v191_v18 }
 0x292   :  { %202 = vst.msk [vmem:[%s371_s9] sm:$0xff] %vm201_vm9, %v199_v19 }
 0x29b   :  { %v194_v20 = vpop.xlane.xlu2 %193 }
 0x29c   :  { %v200_v21 = vadd.f32 %v230_v17, %v194_v20 }
 0x29e   :  { %203 = vst.msk [vmem:[%s371_s9 + $0x8] sm:$0xff] %vm201_vm9, %v200_v21 }

</bundles_post_ra>
